<compile_context>
chip_gen: v7x
topology: tpu7x:2x2x1
jax: 0.10.0
libtpu: 0.0.40
codegen_flags: <defaults>
</compile_context>

<pallas_src>
import functools

import numpy as np
import jax
import jax.numpy as jnp
from jax.experimental import pallas as pl
from jax.experimental.pallas import tpu as pltpu

B = 2          # batch
C_IN = 1500    # conv1 in_channels
L_IN = 40      # input length (forces conv2 output length == 18 == fc1.in_features)
L1 = L_IN - 2        # 38, after conv1 (k=3)
LP = L1 // 2         # 19, after maxpool(2)
L2 = LP - 1          # 18, after conv2 (k=2)
C1 = 16
C2 = 32
H = 300
OUT = 2


def cnn_kernel(x_ref, w1s_ref, b1_ref, w2s_ref, b2_ref,
               fw1t_ref, fb1_ref, fw2t_ref, fb2_ref, sel_ref, out_ref):
    # Number of samples lane-packed into this grid step (static).
    G = out_ref.shape[0]

    # ---- conv1: all 3 taps of ALL packed samples in ONE bf16 MXU matmul.
    # x_ref is (1500, G*40) bf16; w1s is (48, 1500) bf16 with rows grouped by
    # tap: row 16*k + c == w1[c, :, k].
    y = jnp.dot(w1s_ref[...], x_ref[...], preferred_element_type=jnp.float32)  # (48, G*40)

    h2_slabs = []
    for s in range(G):                      # tiny static unroll (G <= batch)
        o = s * L_IN
        # Tap-aligned sum (static lane slices stay inside this sample's 40-lane
        # window), bias, ReLU -> (16, 38).
        h1 = (y[0:C1, o:o + L1]
              + y[C1:2 * C1, o + 1:o + L1 + 1]
              + y[2 * C1:3 * C1, o + 2:o + L1 + 2]
              + b1_ref[...])
        h1 = jnp.maximum(h1, 0.0)

        # ---- MaxPool1d(k=2, s=2): ONE pairwise max on the VPU + ONE 0/1
        # selection matmul with a hoisted bf16 constant (sel[2j, j] == 1).
        m = jnp.maximum(h1[:, 0:L1 - 1], h1[:, 1:L1]).astype(jnp.bfloat16)     # (16, 37)
        p = jnp.dot(m, sel_ref[...], preferred_element_type=jnp.float32)       # (16, 19)

        # ---- conv2: both taps fused; w2s is (64, 16) bf16, row 32*k + o == w2[o, :, k].
        z = jnp.dot(w2s_ref[...], p.astype(jnp.bfloat16),
                    preferred_element_type=jnp.float32)                        # (64, 19)
        h2 = jnp.maximum(z[0:C2, 0:L2] + z[C2:2 * C2, 1:L2 + 1] + b2_ref[...],
                         0.0)                                                  # (32, 18)
        h2_slabs.append(h2)

    # ---- fc1 / fc2 once per step over all packed samples (rows = G*32).
    # fc1 acts on the length axis (PyTorch quirk: flatten is unused).
    if G > 1:
        h2s = jnp.concatenate(h2_slabs, axis=0).astype(jnp.bfloat16)           # (G*32, 18)
    else:
        h2s = h2_slabs[0].astype(jnp.bfloat16)
    h3 = jnp.maximum(
        jnp.dot(h2s, fw1t_ref[...], preferred_element_type=jnp.float32) + fb1_ref[...],
        0.0)                                                                   # (G*32, 300)
    out = (jnp.dot(h3.astype(jnp.bfloat16), fw2t_ref[...],
                   preferred_element_type=jnp.float32) + fb2_ref[...])         # (G*32, 2)

    for s in range(G):
        out_ref[s] = out[s * C2:(s + 1) * C2, :].astype(out_ref.dtype)         # (32, 2)


def pack_params(w1, b1, w2, b2, fw1, fb1, fw2, fb2):
    """One-time weight packing (hoisted out of the per-call forward pass)."""
    w1s = jnp.transpose(w1, (2, 0, 1)).reshape(3 * C1, C_IN).astype(jnp.bfloat16)
    b1c = b1.reshape(C1, 1).astype(jnp.float32)
    w2s = jnp.transpose(w2, (2, 0, 1)).reshape(2 * C2, C1).astype(jnp.bfloat16)
    b2c = b2.reshape(C2, 1).astype(jnp.float32)
    fw1t = jnp.transpose(fw1).astype(jnp.bfloat16)        # (18, 300)
    fb1r = fb1.reshape(1, H).astype(jnp.float32)
    fw2t = jnp.transpose(fw2).astype(jnp.bfloat16)        # (300, 2)
    fb2r = fb2.reshape(1, OUT).astype(jnp.float32)
    # MaxPool even-column selection matrix, built once at trace time (exact in bf16).
    sel_np = np.zeros((L1 - 1, LP), np.float32)
    sel_np[2 * np.arange(LP), np.arange(LP)] = 1.0
    sel = jnp.asarray(sel_np, dtype=jnp.bfloat16)
    return (w1s, b1c, w2s, b2c, fw1t, fb1r, fw2t, fb2r, sel)


def default_samples_per_step(batch: int) -> int:
    """How many samples to lane-pack per grid step.

    Single-TensorCore chips (v5e/v6e): the grid is a serial loop, so fuse the
    whole batch into ONE step (better conv1 MXU N-occupancy, one prologue).
    Multi-TensorCore chips (v7x): keep >= num_cores parallel steps so the
    "parallel" batch grid axis shards across cores.
    """
    num_tc = 1
    try:
        num_tc = int(getattr(jax.devices()[0], "num_cores", 1)) or 1
    except Exception:
        num_tc = 1
    num_tc = max(1, min(num_tc, batch))
    g = max(1, batch // num_tc)
    while g > 1 and batch % g:      # keep the grid evenly divided
        g -= 1
    return g


@functools.partial(jax.jit, static_argnames=("samples_per_step",))
def supervised_1d_cnn(x_ncw, w1s, b1c, w2s, b2c, fw1t, fb1r, fw2t, fb2r, sel,
                      samples_per_step=1):
    """x_ncw: (B, 1500, 40) float32 -> (B, 32, 2) float32 (matches PyTorch forward)."""
    b = x_ncw.shape[0]
    g = int(samples_per_step)
    assert b % g == 0, (b, g)
    steps = b // g

    # Producer-side packing: bf16 (halves the dominant HBM transfer) + g samples
    # packed into the lane axis -> (steps, 1500, g*40).  One-time layout work
    # outside the kernel; the DMA lands data directly in bf16 sublane packing.
    xp = (x_ncw.astype(jnp.bfloat16)
          .reshape(steps, g, C_IN, L_IN)
          .transpose(0, 2, 1, 3)
          .reshape(steps, C_IN, g * L_IN))

    full = lambda shape: pl.BlockSpec(shape, lambda i: (0,) * len(shape))

    flops = 2 * b * (3 * C1 * C_IN * L_IN        # conv1 (fused taps, all lanes)
                     + C1 * (L1 - 1) * LP        # pool selection matmul
                     + 2 * C2 * C1 * LP          # conv2 (fused taps)
                     + C2 * L2 * H               # fc1
                     + C2 * H * OUT)             # fc2
    bytes_accessed = (b * C_IN * L_IN * 2                         # x (bf16)
                      + (3 * C1 * C_IN + 2 * C2 * C1
                         + L2 * H + H * OUT + (L1 - 1) * LP) * 2  # bf16 weights + sel
                      + (C1 + C2 + H + OUT) * 4                   # f32 biases
                      + b * C2 * OUT * 4)                         # output

    return pl.pallas_call(
        cnn_kernel,
        out_shape=jax.ShapeDtypeStruct((b, C2, OUT), jnp.float32),
        grid_spec=pltpu.PrefetchScalarGridSpec(
            num_scalar_prefetch=0,
            grid=(steps,),
            in_specs=[
                pl.BlockSpec((None, C_IN, g * L_IN), lambda i: (i, 0, 0)),  # x, bf16, lane-packed
                full((3 * C1, C_IN)),   # conv1 weights, taps stacked on rows (bf16)
                full((C1, 1)),          # conv1 bias column (f32)
                full((2 * C2, C1)),     # conv2 weights, taps stacked on rows (bf16)
                full((C2, 1)),          # conv2 bias column (f32)
                full((L2, H)),          # fc1 weight^T (18, 300) bf16
                full((1, H)),           # fc1 bias row (f32)
                full((H, OUT)),         # fc2 weight^T (300, 2) bf16
                full((1, OUT)),         # fc2 bias row (f32)
                full((L1 - 1, LP)),     # maxpool even-column selection (bf16 const)
            ],
            out_specs=pl.BlockSpec((g, C2, OUT), lambda i: (i, 0, 0)),
        ),
        compiler_params=pltpu.CompilerParams(dimension_semantics=("parallel",)),
        cost_estimate=pl.CostEstimate(flops=flops, transcendentals=0,
                                      bytes_accessed=bytes_accessed),
    )(xp, w1s, b1c, w2s, b2c, fw1t, fb1r, fw2t, fb2r, sel)


def reference(x, w1, b1, w2, b2, fw1, fb1, fw2, fb2):
    """Pure-JAX reference mirroring the PyTorch forward exactly (f32)."""
    dn = ("NCH", "OIH", "NCH")
    y = jax.lax.conv_general_dilated(x, w1, (1,), "VALID", dimension_numbers=dn)
    y = jax.nn.relu(y + b1[None, :, None])
    y = jax.lax.reduce_window(y, -jnp.inf, jax.lax.max, (1, 1, 2), (1, 1, 2), "VALID")
    y = jax.lax.conv_general_dilated(y, w2, (1,), "VALID", dimension_numbers=dn)
    y = jax.nn.relu(y + b2[None, :, None])
    y = jax.nn.relu(jnp.einsum("bcl,ol->bco", y, fw1) + fb1)
    y = jnp.einsum("bch,oh->bco", y, fw2) + fb2
    return y


if __name__ == "__main__":
    key = jax.random.PRNGKey(0)
    ks = jax.random.split(key, 9)
    x = jax.random.normal(ks[0], (B, C_IN, L_IN), jnp.float32)
    w1 = jax.random.normal(ks[1], (C1, C_IN, 3), jnp.float32) * 0.02
    b1 = jax.random.normal(ks[2], (C1,), jnp.float32) * 0.02
    w2 = jax.random.normal(ks[3], (C2, C1, 2), jnp.float32) * 0.05
    b2 = jax.random.normal(ks[4], (C2,), jnp.float32) * 0.02
    fw1 = jax.random.normal(ks[5], (H, L2), jnp.float32) * 0.05
    fb1 = jax.random.normal(ks[6], (H,), jnp.float32) * 0.02
    fw2 = jax.random.normal(ks[7], (OUT, H), jnp.float32) * 0.05
    fb2 = jax.random.normal(ks[8], (OUT,), jnp.float32) * 0.02

    packed = pack_params(w1, b1, w2, b2, fw1, fb1, fw2, fb2)
    g = default_samples_per_step(B)
    out = jax.block_until_ready(supervised_1d_cnn(x, *packed, samples_per_step=g))

    ref = jax.block_until_ready(reference(x, w1, b1, w2, b2, fw1, fb1, fw2, fb2))
    assert out.shape == (B, C2, OUT), out.shape
    max_err = float(jnp.max(jnp.abs(out - ref)))
    # All matmuls now run on the bf16 MXU path (f32 accumulation); 2e-2 covers it.
    assert jnp.allclose(out, ref, rtol=2e-2, atol=2e-2), max_err

    print("KERNEL_OK")
</pallas_src>

<mosaic_0001>
module attributes {stable_mosaic.version = 11 : i64} {
  func.func @cnn_kernel(%arg0: i32, %arg1: memref<1x1500x80xbf16, #tpu.memory_space<vmem>>, %arg2: memref<48x1500xbf16, #tpu.memory_space<vmem>>, %arg3: memref<16x1xf32, #tpu.memory_space<vmem>>, %arg4: memref<64x16xbf16, #tpu.memory_space<vmem>>, %arg5: memref<32x1xf32, #tpu.memory_space<vmem>>, %arg6: memref<18x300xbf16, #tpu.memory_space<vmem>>, %arg7: memref<1x300xf32, #tpu.memory_space<vmem>>, %arg8: memref<300x2xbf16, #tpu.memory_space<vmem>>, %arg9: memref<1x2xf32, #tpu.memory_space<vmem>>, %arg10: memref<37x19xbf16, #tpu.memory_space<vmem>>, %arg11: memref<2x32x2xf32, #tpu.memory_space<vmem>>) attributes {dimension_semantics = [#tpu.dimension_semantics<parallel>], iteration_bounds = array<i64: 1>, scalar_prefetch = 0 : i64, scratch_operands = 0 : i64, tpu.core_type = #tpu.core_type<tc>, window_params = [{transform_indices = @transform_0, window_bounds = array<i64: 1, 1500, 80>}, {pipeline_mode = #tpu.pipeline_mode<synchronous>, transform_indices = @transform_1, window_bounds = array<i64: 48, 1500>}, {pipeline_mode = #tpu.pipeline_mode<synchronous>, transform_indices = @transform_2, window_bounds = array<i64: 16, 1>}, {pipeline_mode = #tpu.pipeline_mode<synchronous>, transform_indices = @transform_3, window_bounds = array<i64: 64, 16>}, {pipeline_mode = #tpu.pipeline_mode<synchronous>, transform_indices = @transform_4, window_bounds = array<i64: 32, 1>}, {pipeline_mode = #tpu.pipeline_mode<synchronous>, transform_indices = @transform_5, window_bounds = array<i64: 18, 300>}, {pipeline_mode = #tpu.pipeline_mode<synchronous>, transform_indices = @transform_6, window_bounds = array<i64: 1, 300>}, {pipeline_mode = #tpu.pipeline_mode<synchronous>, transform_indices = @transform_7, window_bounds = array<i64: 300, 2>}, {pipeline_mode = #tpu.pipeline_mode<synchronous>, transform_indices = @transform_8, window_bounds = array<i64: 1, 2>}, {pipeline_mode = #tpu.pipeline_mode<synchronous>, transform_indices = @transform_9, window_bounds = array<i64: 37, 19>}, {transform_indices = @transform_10, window_bounds = array<i64: 2, 32, 2>}]} {
    %c0 = arith.constant 0 : index
    %c0_0 = arith.constant 0 : index
    %0 = vector.load %arg2[%c0, %c0_0] : memref<48x1500xbf16, #tpu.memory_space<vmem>>, vector<48x1500xbf16>
    %c0_1 = arith.constant 0 : index
    %c0_2 = arith.constant 0 : index
    %c0_3 = arith.constant 0 : index
    %1 = vector.load %arg1[%c0_1, %c0_2, %c0_3] : memref<1x1500x80xbf16, #tpu.memory_space<vmem>>, vector<1x1500x80xbf16>
    %2 = vector.shape_cast %1 : vector<1x1500x80xbf16> to vector<1500x80xbf16>
    %cst = arith.constant dense<0.000000e+00> : vector<48x80xf32>
    %3 = tpu.matmul %0, %2, %cst {dimension_numbers = #tpu.dot_dimension_numbers<[1], [0], [0], [1], [0, 0, 1, 1], [], []>} : vector<48x1500xbf16>, vector<1500x80xbf16>, vector<48x80xf32> -> vector<48x80xf32>
    %4 = vector.extract_strided_slice %3 {offsets = [0, 0], sizes = [16, 38], strides = [1, 1]} : vector<48x80xf32> to vector<16x38xf32>
    %5 = vector.extract_strided_slice %3 {offsets = [16, 1], sizes = [16, 38], strides = [1, 1]} : vector<48x80xf32> to vector<16x38xf32>
    %6 = arith.addf %4, %5 : vector<16x38xf32>
    %7 = vector.extract_strided_slice %3 {offsets = [32, 2], sizes = [16, 38], strides = [1, 1]} : vector<48x80xf32> to vector<16x38xf32>
    %8 = arith.addf %6, %7 : vector<16x38xf32>
    %c0_4 = arith.constant 0 : index
    %c0_5 = arith.constant 0 : index
    %9 = vector.load %arg3[%c0_4, %c0_5] : memref<16x1xf32, #tpu.memory_space<vmem>>, vector<16x1xf32>
    %10 = vector.broadcast %9 : vector<16x1xf32> to vector<16x38xf32>
    %11 = arith.addf %8, %10 : vector<16x38xf32>
    %cst_6 = arith.constant 0.000000e+00 : f32
    %12 = vector.broadcast %cst_6 : f32 to vector<16x38xf32>
    %13 = arith.maximumf %11, %12 : vector<16x38xf32>
    %14 = vector.extract_strided_slice %13 {offsets = [0, 0], sizes = [16, 37], strides = [1, 1]} : vector<16x38xf32> to vector<16x37xf32>
    %15 = vector.extract_strided_slice %13 {offsets = [0, 1], sizes = [16, 37], strides = [1, 1]} : vector<16x38xf32> to vector<16x37xf32>
    %16 = arith.maximumf %14, %15 : vector<16x37xf32>
    %17 = arith.truncf %16 : vector<16x37xf32> to vector<16x37xbf16>
    %c0_7 = arith.constant 0 : index
    %c0_8 = arith.constant 0 : index
    %18 = vector.load %arg10[%c0_7, %c0_8] : memref<37x19xbf16, #tpu.memory_space<vmem>>, vector<37x19xbf16>
    %cst_9 = arith.constant dense<0.000000e+00> : vector<16x19xf32>
    %19 = tpu.matmul %17, %18, %cst_9 {dimension_numbers = #tpu.dot_dimension_numbers<[1], [0], [0], [1], [0, 0, 1, 1], [], []>} : vector<16x37xbf16>, vector<37x19xbf16>, vector<16x19xf32> -> vector<16x19xf32>
    %c0_10 = arith.constant 0 : index
    %c0_11 = arith.constant 0 : index
    %20 = vector.load %arg4[%c0_10, %c0_11] : memref<64x16xbf16, #tpu.memory_space<vmem>>, vector<64x16xbf16>
    %21 = arith.truncf %19 : vector<16x19xf32> to vector<16x19xbf16>
    %cst_12 = arith.constant dense<0.000000e+00> : vector<64x19xf32>
    %22 = tpu.matmul %20, %21, %cst_12 {dimension_numbers = #tpu.dot_dimension_numbers<[1], [0], [0], [1], [0, 0, 1, 1], [], []>} : vector<64x16xbf16>, vector<16x19xbf16>, vector<64x19xf32> -> vector<64x19xf32>
    %23 = vector.extract_strided_slice %22 {offsets = [0, 0], sizes = [32, 18], strides = [1, 1]} : vector<64x19xf32> to vector<32x18xf32>
    %24 = vector.extract_strided_slice %22 {offsets = [32, 1], sizes = [32, 18], strides = [1, 1]} : vector<64x19xf32> to vector<32x18xf32>
    %25 = arith.addf %23, %24 : vector<32x18xf32>
    %c0_13 = arith.constant 0 : index
    %c0_14 = arith.constant 0 : index
    %26 = vector.load %arg5[%c0_13, %c0_14] : memref<32x1xf32, #tpu.memory_space<vmem>>, vector<32x1xf32>
    %27 = vector.broadcast %26 : vector<32x1xf32> to vector<32x18xf32>
    %28 = arith.addf %25, %27 : vector<32x18xf32>
    %cst_15 = arith.constant 0.000000e+00 : f32
    %29 = vector.broadcast %cst_15 : f32 to vector<32x18xf32>
    %30 = arith.maximumf %28, %29 : vector<32x18xf32>
    %31 = vector.extract_strided_slice %3 {offsets = [0, 40], sizes = [16, 38], strides = [1, 1]} : vector<48x80xf32> to vector<16x38xf32>
    %32 = vector.extract_strided_slice %3 {offsets = [16, 41], sizes = [16, 38], strides = [1, 1]} : vector<48x80xf32> to vector<16x38xf32>
    %33 = arith.addf %31, %32 : vector<16x38xf32>
    %34 = vector.extract_strided_slice %3 {offsets = [32, 42], sizes = [16, 38], strides = [1, 1]} : vector<48x80xf32> to vector<16x38xf32>
    %35 = arith.addf %33, %34 : vector<16x38xf32>
    %c0_16 = arith.constant 0 : index
    %c0_17 = arith.constant 0 : index
    %36 = vector.load %arg3[%c0_16, %c0_17] : memref<16x1xf32, #tpu.memory_space<vmem>>, vector<16x1xf32>
    %37 = vector.broadcast %36 : vector<16x1xf32> to vector<16x38xf32>
    %38 = arith.addf %35, %37 : vector<16x38xf32>
    %cst_18 = arith.constant 0.000000e+00 : f32
    %39 = vector.broadcast %cst_18 : f32 to vector<16x38xf32>
    %40 = arith.maximumf %38, %39 : vector<16x38xf32>
    %41 = vector.extract_strided_slice %40 {offsets = [0, 0], sizes = [16, 37], strides = [1, 1]} : vector<16x38xf32> to vector<16x37xf32>
    %42 = vector.extract_strided_slice %40 {offsets = [0, 1], sizes = [16, 37], strides = [1, 1]} : vector<16x38xf32> to vector<16x37xf32>
    %43 = arith.maximumf %41, %42 : vector<16x37xf32>
    %44 = arith.truncf %43 : vector<16x37xf32> to vector<16x37xbf16>
    %c0_19 = arith.constant 0 : index
    %c0_20 = arith.constant 0 : index
    %45 = vector.load %arg10[%c0_19, %c0_20] : memref<37x19xbf16, #tpu.memory_space<vmem>>, vector<37x19xbf16>
    %cst_21 = arith.constant dense<0.000000e+00> : vector<16x19xf32>
    %46 = tpu.matmul %44, %45, %cst_21 {dimension_numbers = #tpu.dot_dimension_numbers<[1], [0], [0], [1], [0, 0, 1, 1], [], []>} : vector<16x37xbf16>, vector<37x19xbf16>, vector<16x19xf32> -> vector<16x19xf32>
    %c0_22 = arith.constant 0 : index
    %c0_23 = arith.constant 0 : index
    %47 = vector.load %arg4[%c0_22, %c0_23] : memref<64x16xbf16, #tpu.memory_space<vmem>>, vector<64x16xbf16>
    %48 = arith.truncf %46 : vector<16x19xf32> to vector<16x19xbf16>
    %cst_24 = arith.constant dense<0.000000e+00> : vector<64x19xf32>
    %49 = tpu.matmul %47, %48, %cst_24 {dimension_numbers = #tpu.dot_dimension_numbers<[1], [0], [0], [1], [0, 0, 1, 1], [], []>} : vector<64x16xbf16>, vector<16x19xbf16>, vector<64x19xf32> -> vector<64x19xf32>
    %50 = vector.extract_strided_slice %49 {offsets = [0, 0], sizes = [32, 18], strides = [1, 1]} : vector<64x19xf32> to vector<32x18xf32>
    %51 = vector.extract_strided_slice %49 {offsets = [32, 1], sizes = [32, 18], strides = [1, 1]} : vector<64x19xf32> to vector<32x18xf32>
    %52 = arith.addf %50, %51 : vector<32x18xf32>
    %c0_25 = arith.constant 0 : index
    %c0_26 = arith.constant 0 : index
    %53 = vector.load %arg5[%c0_25, %c0_26] : memref<32x1xf32, #tpu.memory_space<vmem>>, vector<32x1xf32>
    %54 = vector.broadcast %53 : vector<32x1xf32> to vector<32x18xf32>
    %55 = arith.addf %52, %54 : vector<32x18xf32>
    %cst_27 = arith.constant 0.000000e+00 : f32
    %56 = vector.broadcast %cst_27 : f32 to vector<32x18xf32>
    %57 = arith.maximumf %55, %56 : vector<32x18xf32>
    %58 = tpu.concatenate %30, %57 in 0 : vector<32x18xf32>, vector<32x18xf32> -> vector<64x18xf32>
    %59 = arith.truncf %58 : vector<64x18xf32> to vector<64x18xbf16>
    %c0_28 = arith.constant 0 : index
    %c0_29 = arith.constant 0 : index
    %60 = vector.load %arg6[%c0_28, %c0_29] : memref<18x300xbf16, #tpu.memory_space<vmem>>, vector<18x300xbf16>
    %cst_30 = arith.constant dense<0.000000e+00> : vector<64x300xf32>
    %61 = tpu.matmul %59, %60, %cst_30 {dimension_numbers = #tpu.dot_dimension_numbers<[1], [0], [0], [1], [0, 0, 1, 1], [], []>} : vector<64x18xbf16>, vector<18x300xbf16>, vector<64x300xf32> -> vector<64x300xf32>
    %c0_31 = arith.constant 0 : index
    %c0_32 = arith.constant 0 : index
    %62 = vector.load %arg7[%c0_31, %c0_32] : memref<1x300xf32, #tpu.memory_space<vmem>>, vector<1x300xf32>
    %63 = vector.broadcast %62 : vector<1x300xf32> to vector<64x300xf32>
    %64 = arith.addf %61, %63 : vector<64x300xf32>
    %cst_33 = arith.constant 0.000000e+00 : f32
    %65 = vector.broadcast %cst_33 : f32 to vector<64x300xf32>
    %66 = arith.maximumf %64, %65 : vector<64x300xf32>
    %67 = arith.truncf %66 : vector<64x300xf32> to vector<64x300xbf16>
    %c0_34 = arith.constant 0 : index
    %c0_35 = arith.constant 0 : index
    %68 = vector.load %arg8[%c0_34, %c0_35] : memref<300x2xbf16, #tpu.memory_space<vmem>>, vector<300x2xbf16>
    %cst_36 = arith.constant dense<0.000000e+00> : vector<64x2xf32>
    %69 = tpu.matmul %67, %68, %cst_36 {dimension_numbers = #tpu.dot_dimension_numbers<[1], [0], [0], [1], [0, 0, 1, 1], [], []>} : vector<64x300xbf16>, vector<300x2xbf16>, vector<64x2xf32> -> vector<64x2xf32>
    %c0_37 = arith.constant 0 : index
    %c0_38 = arith.constant 0 : index
    %70 = vector.load %arg9[%c0_37, %c0_38] : memref<1x2xf32, #tpu.memory_space<vmem>>, vector<1x2xf32>
    %71 = vector.broadcast %70 : vector<1x2xf32> to vector<64x2xf32>
    %72 = arith.addf %69, %71 : vector<64x2xf32>
    %73 = vector.extract_strided_slice %72 {offsets = [0, 0], sizes = [32, 2], strides = [1, 1]} : vector<64x2xf32> to vector<32x2xf32>
    %c0_39 = arith.constant 0 : index
    %c0_40 = arith.constant 0 : index
    %c0_41 = arith.constant 0 : index
    %74 = vector.load %arg11[%c0_39, %c0_40, %c0_41] : memref<2x32x2xf32, #tpu.memory_space<vmem>>, vector<1x32x2xf32>
    %75 = vector.shape_cast %74 : vector<1x32x2xf32> to vector<32x2xf32>
    %76 = vector.shape_cast %73 : vector<32x2xf32> to vector<1x32x2xf32>
    tpu.vector_store %arg11[%c0_39, %c0_40, %c0_41], %76 {strides = array<i32>} : memref<2x32x2xf32, #tpu.memory_space<vmem>>, vector<1x32x2xf32>,
    %77 = vector.extract_strided_slice %72 {offsets = [32, 0], sizes = [32, 2], strides = [1, 1]} : vector<64x2xf32> to vector<32x2xf32>
    %c1 = arith.constant 1 : index
    %c0_42 = arith.constant 0 : index
    %c0_43 = arith.constant 0 : index
    %78 = vector.load %arg11[%c1, %c0_42, %c0_43] : memref<2x32x2xf32, #tpu.memory_space<vmem>>, vector<1x32x2xf32>
    %79 = vector.shape_cast %78 : vector<1x32x2xf32> to vector<32x2xf32>
    %80 = vector.shape_cast %77 : vector<32x2xf32> to vector<1x32x2xf32>
    tpu.vector_store %arg11[%c1, %c0_42, %c0_43], %80 {strides = array<i32>} : memref<2x32x2xf32, #tpu.memory_space<vmem>>, vector<1x32x2xf32>,
    return
  }
  func.func @transform_0(%arg0: i32) -> (i32, i32, i32) {
    %c0_i32 = arith.constant 0 : i32
    %c0_i32_0 = arith.constant 0 : i32
    %c0_i32_1 = arith.constant 0 : i32
    return %arg0, %c0_i32, %c0_i32_0 : i32, i32, i32
  }
  func.func @transform_1(%arg0: i32) -> (i32, i32) {
    %c0_i32 = arith.constant 0 : i32
    %c0_i32_0 = arith.constant 0 : i32
    %c0_i32_1 = arith.constant 0 : i32
    return %c0_i32, %c0_i32_0 : i32, i32
  }
  func.func @transform_2(%arg0: i32) -> (i32, i32) {
    %c0_i32 = arith.constant 0 : i32
    %c0_i32_0 = arith.constant 0 : i32
    %c0_i32_1 = arith.constant 0 : i32
    return %c0_i32, %c0_i32_0 : i32, i32
  }
  func.func @transform_3(%arg0: i32) -> (i32, i32) {
    %c0_i32 = arith.constant 0 : i32
    %c0_i32_0 = arith.constant 0 : i32
    %c0_i32_1 = arith.constant 0 : i32
    return %c0_i32, %c0_i32_0 : i32, i32
  }
  func.func @transform_4(%arg0: i32) -> (i32, i32) {
    %c0_i32 = arith.constant 0 : i32
    %c0_i32_0 = arith.constant 0 : i32
    %c0_i32_1 = arith.constant 0 : i32
    return %c0_i32, %c0_i32_0 : i32, i32
  }
  func.func @transform_5(%arg0: i32) -> (i32, i32) {
    %c0_i32 = arith.constant 0 : i32
    %c0_i32_0 = arith.constant 0 : i32
    %c0_i32_1 = arith.constant 0 : i32
    return %c0_i32, %c0_i32_0 : i32, i32
  }
  func.func @transform_6(%arg0: i32) -> (i32, i32) {
    %c0_i32 = arith.constant 0 : i32
    %c0_i32_0 = arith.constant 0 : i32
    %c0_i32_1 = arith.constant 0 : i32
    return %c0_i32, %c0_i32_0 : i32, i32
  }
  func.func @transform_7(%arg0: i32) -> (i32, i32) {
    %c0_i32 = arith.constant 0 : i32
    %c0_i32_0 = arith.constant 0 : i32
    %c0_i32_1 = arith.constant 0 : i32
    return %c0_i32, %c0_i32_0 : i32, i32
  }
  func.func @transform_8(%arg0: i32) -> (i32, i32) {
    %c0_i32 = arith.constant 0 : i32
    %c0_i32_0 = arith.constant 0 : i32
    %c0_i32_1 = arith.constant 0 : i32
    return %c0_i32, %c0_i32_0 : i32, i32
  }
  func.func @transform_9(%arg0: i32) -> (i32, i32) {
    %c0_i32 = arith.constant 0 : i32
    %c0_i32_0 = arith.constant 0 : i32
    %c0_i32_1 = arith.constant 0 : i32
    return %c0_i32, %c0_i32_0 : i32, i32
  }
  func.func @transform_10(%arg0: i32) -> (i32, i32, i32) {
    %c0_i32 = arith.constant 0 : i32
    %c0_i32_0 = arith.constant 0 : i32
    %c0_i32_1 = arith.constant 0 : i32
    return %arg0, %c0_i32, %c0_i32_0 : i32, i32, i32
  }
}

</mosaic_0001>

<bundles_post_ra>
// kernel: supervised_1d_cnn.1
= control target key start
LH: loop header
LB: loop body
LE: loop exit
PB: predicated region body
PF: predicated region fallthrough
CT: control target
= control target key end

     0   :  { %v3038_v1 = vmov 0   ;;  %vm1000_vm0 = vcmask 752640   ;;  %vm1010_vm1 = vcmask 1045504   ;;  %vm1427_vm2 = vcmask 1041408   ;;  %s3044_s23 = smov 88   ;;  %s3778_s0 = inlined_call_operand.vmem [shape: bf16[1,1500,80], index: 0, kind: input, shape index: {}]   ;;  %s3779_s1 = inlined_call_operand.vmem [shape: bf16[48,1500], index: 1, kind: input, shape index: {}]   ;;  %s3780_s2 = inlined_call_operand.vmem [shape: f32[16,1], index: 2, kind: input, shape index: {}]   ;;  %s3781_s9 = inlined_call_operand.vmem [shape: bf16[37,19], index: 9, kind: input, shape index: {}]   ;;  %s3782_s4 = inlined_call_operand.vmem [shape: f32[32,1], index: 4, kind: input, shape index: {}]   ;;  %s3783_s3 = inlined_call_operand.vmem [shape: bf16[64,16], index: 3, kind: input, shape index: {}]   ;;  %s3784_s5 = inlined_call_operand.vmem [shape: bf16[18,300], index: 5, kind: input, shape index: {}]   ;;  %s3785_s7 = inlined_call_operand.vmem [shape: bf16[300,2], index: 7, kind: input, shape index: {}]   ;;  %s3786_s6 = inlined_call_operand.vmem [shape: f32[1,300], index: 6, kind: input, shape index: {}]   ;;  %s3787_s8 = inlined_call_operand.vmem [shape: f32[1,2], index: 8, kind: input, shape index: {}]   ;;  %s3788_s10 = inlined_call_operand.vmem [shape: f32[2,32,2], index: 10, kind: output, shape index: {}]  }
   0x1   :  { %v2857_v0 = vld [vmem:[%s3778_s0 + $0x40] sm:$0xff]   ;;  %2850 = vset.pattern.permute.xlu0 %v3038_v1  ;;  %2856 = vset.pattern.permute.xlu1 %v3038_v1  ;;  %v2861_v5 = vld [vmem:[%s3778_s0 + $0x48] sm:$0xff]   ;;  %v2865_v9 = vld [vmem:[%s3778_s0 + $0x50] sm:$0xff]   ;;  %vm1428_vm3 = vcmask 1042432   ;;  %vm3043_vm4 = vmmov 0   ;;  %vm1423_vm5 = vcmask 302080  }
   0x2   :  { %v2858_v2 = vld [vmem:[%s3778_s0 + $0xc0] sm:$0xff]   ;;  %2534 = vmatprep.subr.bf16.mxu0 %v2857_v0  ;;  %v2862_v6 = vld [vmem:[%s3778_s0 + $0xc8] sm:$0xff]   ;;  %v2866_v10 = vld [vmem:[%s3778_s0 + $0xd0] sm:$0xff]   ;;  %vm1504_vm6 = vcmask 130048   ;;  %vm1839_vm7 = vcmask 1040384   ;;  %vm1826_vm8 = vcmask 146432  }
   0x3   :  { %v2859_v3 = vld [vmem:[%s3778_s0] sm:$0xff]   ;;  %2568 = vmatprep.subr.bf16.mxu1 %v2858_v2  ;;  %v2863_v7 = vld [vmem:[%s3778_s0 + $0x8] sm:$0xff]   ;;  %v2867_v11 = vld [vmem:[%s3778_s0 + $0x10] sm:$0xff]   ;;  %vm2181_vm9 = vcmask 359424   ;;  %vm2327_vm10 = vcmask 15360  }
   0x4   :  { %v2860_v4 = vld [vmem:[%s3778_s0 + $0x80] sm:$0xff]   ;;  %2535 = vmatpush3.bf16.msra.mxu0 %v2859_v3  ;;  %v2864_v8 = vld [vmem:[%s3778_s0 + $0x88] sm:$0xff]   ;;  %v2868_v12 = vld [vmem:[%s3778_s0 + $0x90] sm:$0xff]  }
   0x5   :  { %2569 = vmatpush3.bf16.msra.mxu1 %v2860_v4  ;;  %2536 = vmatprep.subr.bf16.mxu0 %v2861_v5  ;;  %v2869_v13 = vld [vmem:[%s3778_s0 + $0x58] sm:$0xff]   ;;  %v2873_v17 = vld [vmem:[%s3778_s0 + $0x60] sm:$0xff]   ;;  %v2877_v21 = vld [vmem:[%s3778_s0 + $0x68] sm:$0xff]  }
   0x6   :  { %2570 = vmatprep.subr.bf16.mxu1 %v2862_v6  ;;  %v2870_v14 = vld [vmem:[%s3778_s0 + $0xd8] sm:$0xff]   ;;  %v2874_v18 = vld [vmem:[%s3778_s0 + $0xe0] sm:$0xff]   ;;  %v2878_v22 = vld [vmem:[%s3778_s0 + $0xe8] sm:$0xff]  }
   0x7   :  { %v2871_v15 = vld [vmem:[%s3778_s0 + $0x18] sm:$0xff]   ;;  %v2875_v19 = vld [vmem:[%s3778_s0 + $0x20] sm:$0xff]   ;;  %v2879_v23 = vld [vmem:[%s3778_s0 + $0x28] sm:$0xff]  }
   0x8   :  { %2537 = vmatpush3.bf16.msra.mxu0 %v2863_v7  ;;  %v2872_v16 = vld [vmem:[%s3778_s0 + $0x98] sm:$0xff]   ;;  %v2876_v20 = vld [vmem:[%s3778_s0 + $0xa0] sm:$0xff]   ;;  %v2880_v24 = vld [vmem:[%s3778_s0 + $0xa8] sm:$0xff]  }
   0x9   :  { %2571 = vmatpush3.bf16.msra.mxu1 %v2864_v8  ;;  %2538 = vmatprep.subr.bf16.mxu0 %v2865_v9  ;;  %v2881_v25 = vld [vmem:[%s3778_s0 + $0x70] sm:$0xff]   ;;  %v2885_v29 = vld [vmem:[%s3778_s0 + $0x78] sm:$0xff]   ;;  %v2895_v37 = vld [vmem:[%s3778_s0 + $0x140] sm:$0xff]  }
   0xa   :  { %2572 = vmatprep.subr.bf16.mxu1 %v2866_v10  ;;  %v2882_v26 = vld [vmem:[%s3778_s0 + $0xf0] sm:$0xff]   ;;  %v2886_v30 = vld [vmem:[%s3778_s0 + $0xf8] sm:$0xff]   ;;  %v2896_v38 = vld [vmem:[%s3778_s0 + $0x1c0] sm:$0xff]  }
   0xb   :  { %v2883_v27 = vld [vmem:[%s3778_s0 + $0x30] sm:$0xff]   ;;  %v2887_v31 = vld [vmem:[%s3778_s0 + $0x38] sm:$0xff]   ;;  %v2897_v39 = vld [vmem:[%s3778_s0 + $0x100] sm:$0xff]  }
   0xc   :  { %2539 = vmatpush3.bf16.msra.mxu0 %v2867_v11  ;;  %v2884_v28 = vld [vmem:[%s3778_s0 + $0xb0] sm:$0xff]   ;;  %v2888_v32 = vld [vmem:[%s3778_s0 + $0xb8] sm:$0xff]   ;;  %v2898_v40 = vld [vmem:[%s3778_s0 + $0x180] sm:$0xff]  }
   0xd   :  { %2573 = vmatpush3.bf16.msra.mxu1 %v2868_v12  ;;  %2540 = vmatprep.subr.bf16.mxu0 %v2869_v13  ;;  %v2889_v33 = vld [vmem:[%s3779_s1] ss:$48 sps:$4 sm:$0xff]   ;;  %v2891_v34 = vld [vmem:[%s3779_s1 + $0x4] ss:$48 sps:$4 sm:$0xff]   ;;  %v2892_v35 = vld [vmem:[%s3779_s1 + $0x8] ss:$48 sps:$4 sm:$0xff]  }
   0xe   :  { %2574 = vmatprep.subr.bf16.mxu1 %v2870_v14  ;;  %v2894_v36 = vld [vmem:[%s3779_s1 + $0xc] ss:$48 sps:$4 sm:$0xff]   ;;  %1046 = vmatprep.mubr.bf16.mxu0 %v2891_v34  ;;  %v2903_v45 = vld [vmem:[%s3778_s0 + $0x150] sm:$0xff]   ;;  %v2916_v56 = vld [vmem:[%s3779_s1 + $0x68] ss:$48 sps:$4 sm:$0xff]  }
   0xf   :  { %1103 = vmatprep.mubr.bf16.mxu1 %v2894_v36  ;;  %v2899_v41 = vld [vmem:[%s3778_s0 + $0x148] sm:$0xff]   ;;  %v2904_v46 = vld [vmem:[%s3778_s0 + $0x1d0] sm:$0xff]   ;;  %v2907_v49 = vld [vmem:[%s3778_s0 + $0x158] sm:$0xff]  }
  0x10   :  { %2541 = vmatpush3.bf16.msra.mxu0 %v2871_v15  ;;  %v2900_v42 = vld [vmem:[%s3778_s0 + $0x1c8] sm:$0xff]   ;;  %v2905_v47 = vld [vmem:[%s3778_s0 + $0x110] sm:$0xff]   ;;  %v2908_v50 = vld [vmem:[%s3778_s0 + $0x1d8] sm:$0xff]  }
  0x11   :  { %2575 = vmatpush3.bf16.msra.mxu1 %v2872_v16  ;;  %2542 = vmatprep.subr.bf16.mxu0 %v2873_v17  ;;  %v2901_v43 = vld [vmem:[%s3778_s0 + $0x108] sm:$0xff]   ;;  %v2906_v48 = vld [vmem:[%s3778_s0 + $0x190] sm:$0xff]   ;;  %v2913_v53 = vld [vmem:[%s3778_s0 + $0x118] sm:$0xff]  }
  0x12   :  { %2576 = vmatprep.subr.bf16.mxu1 %v2874_v18  ;;  %v2902_v44 = vld [vmem:[%s3778_s0 + $0x188] sm:$0xff]   ;;  %v2909_v51 = vld [vmem:[%s3779_s1 + $0x64] ss:$48 sps:$4 sm:$0xff]   ;;  %v2914_v54 = vld [vmem:[%s3778_s0 + $0x198] sm:$0xff]  }
  0x13   :  { %v2911_v52 = vld [vmem:[%s3779_s1 + $0x6c] ss:$48 sps:$4 sm:$0xff]   ;;  %v2915_v55 = vld [vmem:[%s3779_s1 + $0x60] ss:$48 sps:$4 sm:$0xff]   ;;  %v2923_v63 = vld [vmem:[%s3779_s1 + $0xc4] ss:$48 sps:$4 sm:$0xff]  }
  0x14   :  { %2543 = vmatpush3.bf16.msra.mxu0 %v2875_v19  ;;  %v2917_v57 = vld [vmem:[%s3778_s0 + $0x160] sm:$0xff]   ;;  %v2921_v61 = vld [vmem:[%s3778_s0 + $0x168] sm:$0xff]   ;;  %v2931_v6 = vld [vmem:[%s3778_s0 + $0x170] sm:$0xff]  }
  0x15   :  { %2577 = vmatpush3.bf16.msra.mxu1 %v2876_v20  ;;  %2544 = vmatprep.subr.bf16.mxu0 %v2877_v21  ;;  %v2918_v58 = vld [vmem:[%s3778_s0 + $0x1e0] sm:$0xff]   ;;  %v2922_v62 = vld [vmem:[%s3778_s0 + $0x1e8] sm:$0xff]   ;;  %v2932_v7 = vld [vmem:[%s3778_s0 + $0x1f0] sm:$0xff]  }
  0x16   :  { %2578 = vmatprep.subr.bf16.mxu1 %v2878_v22  ;;  %v2919_v59 = vld [vmem:[%s3778_s0 + $0x120] sm:$0xff]   ;;  %v2925_v0 = vld [vmem:[%s3779_s1 + $0xcc] ss:$48 sps:$4 sm:$0xff]   ;;  %v2930_v5 = vld [vmem:[%s3779_s1 + $0xc8] ss:$48 sps:$4 sm:$0xff]  }
  0x17   :  { %v2920_v60 = vld [vmem:[%s3778_s0 + $0x1a0] sm:$0xff]   ;;  %v2927_v2 = vld [vmem:[%s3778_s0 + $0x128] sm:$0xff]   ;;  %v2933_v8 = vld [vmem:[%s3778_s0 + $0x130] sm:$0xff]  }
  0x18   :  { %2545 = vmatpush3.bf16.msra.mxu0 %v2879_v23  ;;  %v2928_v3 = vld [vmem:[%s3778_s0 + $0x1a8] sm:$0xff]   ;;  %v2929_v4 = vld [vmem:[%s3779_s1 + $0xc0] ss:$48 sps:$4 sm:$0xff]   ;;  %v2935_v10 = vld [vmem:[%s3778_s0 + $0x178] sm:$0xff]  }
  0x19   :  { %2579 = vmatpush3.bf16.msra.mxu1 %v2880_v24  ;;  %2546 = vmatprep.subr.bf16.mxu0 %v2881_v25  ;;  %v2934_v9 = vld [vmem:[%s3778_s0 + $0x1b0] sm:$0xff]   ;;  %v2936_v11 = vld [vmem:[%s3778_s0 + $0x1f8] sm:$0xff]   ;;  %v2945_v18 = vld [vmem:[%s3778_s0 + $0x240] sm:$0xff]  }
  0x1a   :  { %2580 = vmatprep.subr.bf16.mxu1 %v2882_v26  ;;  %v2937_v12 = vld [vmem:[%s3778_s0 + $0x138] sm:$0xff]   ;;  %v2939_v14 = vld [vmem:[%s3779_s1 + $0x10] ss:$48 sps:$4 sm:$0xff]   ;;  %v2941_v15 = vld [vmem:[%s3779_s1 + $0x14] ss:$48 sps:$4 sm:$0xff]  }
  0x1b   :  { %v2938_v13 = vld [vmem:[%s3778_s0 + $0x1b8] sm:$0xff]   ;;  %v2946_v19 = vld [vmem:[%s3778_s0 + $0x200] sm:$0xff]   ;;  %v2948_v21 = vld [vmem:[%s3778_s0 + $0x248] sm:$0xff]  }
  0x1c   :  { %2547 = vmatpush3.bf16.msra.mxu0 %v2883_v27  ;;  %v2942_v16 = vld [vmem:[%s3779_s1 + $0x18] ss:$48 sps:$4 sm:$0xff]   ;;  %v2944_v17 = vld [vmem:[%s3779_s1 + $0x1c] ss:$48 sps:$4 sm:$0xff]   ;;  %v2947_v20 = vld [vmem:[%s3778_s0 + $0x280] sm:$0xff]  }
  0x1d   :  { %2581 = vmatpush3.bf16.msra.mxu1 %v2884_v28  ;;  %2548 = vmatprep.subr.bf16.mxu0 %v2885_v29  ;;  %v2949_v22 = vld [vmem:[%s3778_s0 + $0x208] sm:$0xff]   ;;  %v2951_v24 = vld [vmem:[%s3779_s1 + $0x74] ss:$48 sps:$4 sm:$0xff]   ;;  %v2953_v25 = vld [vmem:[%s3779_s1 + $0x70] ss:$48 sps:$4 sm:$0xff]  }
  0x1e   :  { %2582 = vmatprep.subr.bf16.mxu1 %v2886_v30  ;;  %v2950_v23 = vld [vmem:[%s3778_s0 + $0x288] sm:$0xff]   ;;  %v2954_v26 = vld [vmem:[%s3778_s0 + $0x250] sm:$0xff]   ;;  %v2966_v36 = vld [vmem:[%s3778_s0 + $0x260] sm:$0xff]  }
  0x1f   :  { %v2955_v27 = vld [vmem:[%s3779_s1 + $0x7c] ss:$48 sps:$4 sm:$0xff]   ;;  %v2957_v28 = vld [vmem:[%s3778_s0 + $0x210] sm:$0xff]   ;;  %v2959_v30 = vld [vmem:[%s3779_s1 + $0x78] ss:$48 sps:$4 sm:$0xff]  }
  0x20   :  { %2549 = vmatpush3.bf16.msra.mxu0 %v2887_v31  ;;  %v2958_v29 = vld [vmem:[%s3778_s0 + $0x290] sm:$0xff]   ;;  %v2960_v31 = vld [vmem:[%s3778_s0 + $0x258] sm:$0xff]  }
  0x21   :  { %2583 = vmatpush3.bf16.msra.mxu1 %v2888_v32  ;;  %2602 = vmatprep.subr.bf16.mxu0 %v2895_v37  ;;  %v2961_v32 = vld [vmem:[%s3778_s0 + $0x218] sm:$0xff]   ;;  %v2963_v34 = vld [vmem:[%s3779_s1 + $0xd4] ss:$48 sps:$4 sm:$0xff]  }
  0x22   :  { %2636 = vmatprep.subr.bf16.mxu1 %v2896_v38  ;;  %v2967_v37 = vld [vmem:[%s3779_s1 + $0xdc] ss:$48 sps:$4 sm:$0xff]   ;;  %v2969_v38 = vld [vmem:[%s3778_s0 + $0x220] sm:$0xff]  }
  0x23   :  { %1047 = vmatmul.mubr.bf16.vlgmr.msra.gmra.mrb[0].mxu0 %v2889_v33  ;;  %v2962_v33 = vld [vmem:[%s3778_s0 + $0x298] sm:$0xff]  }
  0x24   :  { %1104 = vmatmul.mubr.bf16.vlgmr.msra.gmra.mrb[0].mxu1 %v2892_v35  ;;  %2603 = vmatpush3.bf16.msra.mxu0 %v2897_v39  ;;  %v2965_v35 = vld [vmem:[%s3779_s1 + $0xd0] ss:$48 sps:$4 sm:$0xff]  }
  0x25   :  { %2637 = vmatpush3.bf16.msra.mxu1 %v2898_v40  ;;  %2604 = vmatprep.subr.bf16.mxu0 %v2899_v41  ;;  %v2970_v39 = vld [vmem:[%s3778_s0 + $0x2a0] sm:$0xff]   ;;  %v2971_v40 = vld [vmem:[%s3779_s1 + $0xd8] ss:$48 sps:$4 sm:$0xff]  }
  0x26   :  { %2638 = vmatprep.subr.bf16.mxu1 %v2900_v42  ;;  %1054 = vmatprep.mubr.bf16.mxu0 %v2909_v51  ;;  %v2972_v41 = vld [vmem:[%s3778_s0 + $0x268] sm:$0xff]   ;;  %v2981_v51 = vld [vmem:[%s3779_s1 + $0x20] ss:$48 sps:$4 sm:$0xff]  }
  0x27   :  { %1111 = vmatprep.mubr.bf16.mxu1 %v2911_v52  ;;  %v2973_v42 = vld [vmem:[%s3778_s0 + $0x228] sm:$0xff]   ;;  %v2984_v52 = vld [vmem:[%s3778_s0 + $0x2c0] sm:$0xff]  }
  0x28   :  { %2605 = vmatpush3.bf16.msra.mxu0 %v2901_v43  ;;  %v2974_v43 = vld [vmem:[%s3778_s0 + $0x2a8] sm:$0xff]  }
  0x29   :  { %2639 = vmatpush3.bf16.msra.mxu1 %v2902_v44  ;;  %2606 = vmatprep.subr.bf16.mxu0 %v2903_v45  ;;  %v2975_v44 = vld [vmem:[%s3778_s0 + $0x270] sm:$0xff]  }
  0x2a   :  { %2640 = vmatprep.subr.bf16.mxu1 %v2904_v46  ;;  %v2976_v45 = vld [vmem:[%s3778_s0 + $0x230] sm:$0xff]  }
  0x2b   :  { %1055 = vmatmul.mubr.bf16.gmra.mrb[4].mxu0 %v2915_v55  ;;  %v2977_v46 = vld [vmem:[%s3778_s0 + $0x2b0] sm:$0xff]  }
  0x2c   :  { %2607 = vmatpush3.bf16.msra.mxu0 %v2905_v47  ;;  %1112 = vmatmul.mubr.bf16.gmra.mrb[4].mxu1 %v2916_v56  ;;  %v2978_v47 = vld [vmem:[%s3778_s0 + $0x278] sm:$0xff]   ;;  %v2988_v55 = vld [vmem:[%s3779_s1 + $0x80] ss:$48 sps:$4 sm:$0xff]   ;;  %v2991_v56 = vld [vmem:[%s3779_s1 + $0xe4] ss:$48 sps:$4 sm:$0xff]  }
  0x2d   :  { %2641 = vmatpush3.bf16.msra.mxu1 %v2906_v48  ;;  %2608 = vmatprep.subr.bf16.mxu0 %v2907_v49  ;;  %v2979_v48 = vld [vmem:[%s3778_s0 + $0x238] sm:$0xff]  }
  0x2e   :  { %2642 = vmatprep.subr.bf16.mxu1 %v2908_v50  ;;  %1062 = vmatprep.mubr.bf16.mxu0 %v2923_v63  ;;  %v2980_v49 = vld [vmem:[%s3778_s0 + $0x2b8] sm:$0xff]   ;;  %v2983_v50 = vld [vmem:[%s3779_s1 + $0x24] ss:$48 sps:$4 sm:$0xff]  }
  0x2f   :  { %1119 = vmatprep.mubr.bf16.mxu1 %v2925_v0  ;;  %v2996_v0 = vld [vmem:[%s3779_s1 + $0x28] ss:$48 sps:$4 sm:$0xff]  }
  0x30   :  { %2609 = vmatpush3.bf16.msra.mxu0 %v2913_v53  ;;  %v2986_v53 = vld [vmem:[%s3779_s1 + $0x84] ss:$48 sps:$4 sm:$0xff]  }
  0x31   :  { %2643 = vmatpush3.bf16.msra.mxu1 %v2914_v54  ;;  %2610 = vmatprep.subr.bf16.mxu0 %v2917_v57  ;;  %v2985_v54 = vld [vmem:[%s3778_s0 + $0x2c8] sm:$0xff]  }
  0x32   :  { %2644 = vmatprep.subr.bf16.mxu1 %v2918_v58  ;;  %v2998_v57 = vld [vmem:[%s3779_s1 + $0x2c] ss:$48 sps:$4 sm:$0xff]   ;;  %v2989_v58 = vld [vmem:[%s3778_s0 + $0x2d0] sm:$0xff]  }
  0x33   :  { %1063 = vmatmul.mubr.bf16.gmra.mrb[8].mxu0 %v2929_v4  ;;  %v3002_v4 = vld [vmem:[%s3779_s1 + $0xec] ss:$48 sps:$4 sm:$0xff]  }
  0x34   :  { %2611 = vmatpush3.bf16.msra.mxu0 %v2919_v59  ;;  %1120 = vmatmul.mubr.bf16.gmra.mrb[8].mxu1 %v2930_v5  ;;  %v2990_v59 = vld [vmem:[%s3778_s0 + $0x2d8] sm:$0xff]  }
  0x35   :  { %2645 = vmatpush3.bf16.msra.mxu1 %v2920_v60  ;;  %2612 = vmatprep.subr.bf16.mxu0 %v2921_v61  ;;  %v2993_v60 = vld [vmem:[%s3779_s1 + $0xe0] ss:$48 sps:$4 sm:$0xff]   ;;  %v3004_v5 = vld [vmem:[%s3779_s1 + $0xe8] ss:$48 sps:$4 sm:$0xff]  }
  0x36   :  { %2646 = vmatprep.subr.bf16.mxu1 %v2922_v62  ;;  %1160 = vmatprep.mubr.bf16.mxu0 %v2941_v15  ;;  %v2994_v61 = vld [vmem:[%s3778_s0 + $0x2e0] sm:$0xff]   ;;  %v2995_v62 = vld [vmem:[%s3778_s0 + $0x2e8] sm:$0x3f]  }
  0x37   :  { %1217 = vmatprep.mubr.bf16.mxu1 %v2944_v17  ;;  %v1012_v63 = vsel %vm1010_vm1, %v2995_v62, 0 }
  0x38   :  { %2613 = vmatpush3.bf16.msra.mxu0 %v2927_v2  ;;  %v2999_v2 = vld [vmem:[%s3779_s1 + $0x8c] ss:$48 sps:$4 sm:$0xff]  }
  0x39   :  { %2647 = vmatpush3.bf16.msra.mxu1 %v2928_v3  ;;  %2614 = vmatprep.subr.bf16.mxu0 %v2931_v6  ;;  %v3001_v3 = vld [vmem:[%s3779_s1 + $0x88] ss:$48 sps:$4 sm:$0xff]   ;;  %v1376_v6 = vld [vmem:[%s3780_s2] sm:$0xff]  ;;  %s3039_s1 = smov 127  }
  0x3a   :  { %2648 = vmatprep.subr.bf16.mxu1 %v2932_v7  ;;  %1380 = vperm.xlu0 %2850, %v1376_v6   ;;  %v1377_v7 = vld [vmem:[%s3780_s2 + $0x8] sm:$0xff]  ;;  %s3040_s2 = smov 126  }
  0x3c   :  { %2615 = vmatpush3.bf16.msra.mxu0 %v2933_v8 }
  0x3d   :  { %2649 = vmatpush3.bf16.msra.mxu1 %v2934_v9  ;;  %2616 = vmatprep.subr.bf16.mxu0 %v2935_v10 }
  0x3e   :  { %2650 = vmatprep.subr.bf16.mxu1 %v2936_v11  ;;  %1385 = vperm.xlu0 %2850, %v1377_v7  }
  0x40   :  { %2617 = vmatpush3.bf16.msra.mxu0 %v2937_v12 }
  0x41   :  { %2651 = vmatpush3.bf16.msra.mxu1 %v2938_v13  ;;  %2670 = vmatprep.subr.bf16.mxu0 %v2945_v18 }
  0x42   :  { %1299 = vmatprep.subr.bf16.mxu1 %v3038_v1 }
  0x43   :  { %1161 = vmatmul.mubr.bf16.vlgmr.msra.gmra.mrb[12].mxu0 %v2939_v14 }
  0x44   :  { %1218 = vmatmul.mubr.bf16.vlgmr.msra.gmra.mrb[12].mxu1 %v2942_v16  ;;  %2671 = vmatpush3.bf16.msra.mxu0 %v2946_v19 }
  0x45   :  { %1300 = vmatpush1.bf16.msra.mxu1 %v2947_v20  ;;  %2672 = vmatprep.subr.bf16.mxu0 %v2948_v21 }
  0x46   :  { %1301 = vmatprep.subr.bf16.mxu1 %v3038_v1  ;;  %1168 = vmatprep.mubr.bf16.mxu0 %v2951_v24 }
  0x47   :  { %1225 = vmatprep.mubr.bf16.mxu1 %v2955_v27 }
  0x48   :  { %2673 = vmatpush3.bf16.msra.mxu0 %v2949_v22 }
  0x49   :  { %1302 = vmatpush1.bf16.msra.mxu1 %v2950_v23  ;;  %2674 = vmatprep.subr.bf16.mxu0 %v2954_v26 }
  0x4a   :  { %1303 = vmatprep.subr.bf16.mxu1 %v3038_v1 }
  0x4b   :  { %1169 = vmatmul.mubr.bf16.gmra.mrb[16].mxu0 %v2953_v25 }
  0x4c   :  { %2675 = vmatpush3.bf16.msra.mxu0 %v2957_v28  ;;  %1226 = vmatmul.mubr.bf16.gmra.mrb[16].mxu1 %v2959_v30 }
  0x4d   :  { %1304 = vmatpush1.bf16.msra.mxu1 %v2958_v29  ;;  %2676 = vmatprep.subr.bf16.mxu0 %v2960_v31 }
  0x4e   :  { %1305 = vmatprep.subr.bf16.mxu1 %v3038_v1  ;;  %1176 = vmatprep.mubr.bf16.mxu0 %v2963_v34 }
  0x4f   :  { %1233 = vmatprep.mubr.bf16.mxu1 %v2967_v37 }
  0x50   :  { %2677 = vmatpush3.bf16.msra.mxu0 %v2961_v32 }
  0x51   :  { %1306 = vmatpush1.bf16.msra.mxu1 %v2962_v33  ;;  %2678 = vmatprep.subr.bf16.mxu0 %v2966_v36 }
  0x52   :  { %1307 = vmatprep.subr.bf16.mxu1 %v3038_v1 }
  0x53   :  { %1177 = vmatmul.mubr.bf16.gmra.mrb[20].mxu0 %v2965_v35 }
  0x54   :  { %2679 = vmatpush3.bf16.msra.mxu0 %v2969_v38  ;;  %1234 = vmatmul.mubr.bf16.gmra.mrb[20].mxu1 %v2971_v40 }
  0x55   :  { %1308 = vmatpush1.bf16.msra.mxu1 %v2970_v39  ;;  %2680 = vmatprep.subr.bf16.mxu0 %v2972_v41 }
  0x56   :  { %1309 = vmatprep.subr.bf16.mxu1 %v3038_v1  ;;  %1274 = vmatprep.mubr.bf16.mxu0 %v2983_v50 }
  0x57   :  { %2471 = vmatprep.mubr.msk.bf16.mxu1 %vm1000_vm0, %v2998_v57 }
  0x58   :  { %2681 = vmatpush3.bf16.msra.mxu0 %v2973_v42 }
  0x59   :  { %1310 = vmatpush1.bf16.msra.mxu1 %v2974_v43  ;;  %2682 = vmatprep.subr.bf16.mxu0 %v2975_v44 }
  0x5a   :  { %1311 = vmatprep.subr.bf16.mxu1 %v3038_v1 }
  0x5c   :  { %2683 = vmatpush3.bf16.msra.mxu0 %v2976_v45 }
  0x5d   :  { %1312 = vmatpush1.bf16.msra.mxu1 %v2977_v46  ;;  %2684 = vmatprep.subr.bf16.mxu0 %v2978_v47 }
  0x5e   :  { %1313 = vmatprep.subr.bf16.mxu1 %v3038_v1 }
  0x60   :  { %2685 = vmatpush3.bf16.msra.mxu0 %v2979_v48 }
  0x61   :  { %1314 = vmatpush1.bf16.msra.mxu1 %v2980_v49 }
  0x62   :  { %1315 = vmatprep.subr.bf16.mxu1 %v3038_v1 }
  0x63   :  { %1275 = vmatmul.mubr.bf16.vlgmr.msra.gmra.mrb[24].mxu0 %v2981_v51 }
  0x64   :  { %1282 = vmatprep.mubr.bf16.mxu0 %v2986_v53 }
  0x65   :  { %1316 = vmatpush1.bf16.msra.mxu1 %v2984_v52 }
  0x66   :  { %1317 = vmatprep.subr.bf16.mxu1 %v3038_v1 }
  0x69   :  { %1318 = vmatpush1.bf16.msra.mxu1 %v2985_v54 }
  0x6a   :  { %1319 = vmatprep.subr.bf16.mxu1 %v3038_v1 }
  0x6b   :  { %1283 = vmatmul.mubr.bf16.gmra.mrb[28].mxu0 %v2988_v55 }
  0x6c   :  { %1290 = vmatprep.mubr.bf16.mxu0 %v2991_v56 }
  0x6d   :  { %1320 = vmatpush1.bf16.msra.mxu1 %v2989_v58 }
  0x6e   :  { %1321 = vmatprep.subr.bf16.mxu1 %v3038_v1 }
  0x71   :  { %1322 = vmatpush1.bf16.msra.mxu1 %v2990_v59 }
  0x72   :  { %1323 = vmatprep.subr.bf16.mxu1 %v3038_v1 }
  0x73   :  { %1291 = vmatmul.mubr.bf16.gmra.mrb[32].mxu0 %v2993_v60 }
  0x75   :  { %1324 = vmatpush1.bf16.msra.mxu1 %v2994_v61 }
  0x76   :  { %1325 = vmatprep.subr.bf16.mxu1 %v3038_v1 }
  0x79   :  { %1326 = vmatpush1.bf16.msra.mxu1 %v1012_v63 }
  0x7c   :  { %1332 = vmatmul.mubr.bf16.vlgmr.msra.gmra.mrb[24].mxu1 %v2996_v0 }
  0x7d   :  { %2472 = vmatprep.mubr.msk.bf16.mxu1 %vm1000_vm0, %v2999_v2 }
  0x84   :  { %1340 = vmatmul.mubr.bf16.gmra.mrb[28].mxu1 %v3001_v3 }
  0x85   :  { %2473 = vmatprep.mubr.msk.bf16.mxu1 %vm1000_vm0, %v3002_v4 }
  0x8c   :  { %1348 = vmatmul.mubr.bf16.gmra.mrb[32].mxu1 %v3004_v5 }
  0xf6   :  { %v2550_v8 = vpop.f32.mrb[0].mxu0 }
  0xf7   :  { %v2584_v9 = vpop.f32.mrb[0].mxu1  ;;  %v2551_v10 = vpop.f32.mrb[1].mxu0 }
  0xf8   :  { %v2552_v11 = vadd.f32 %v2551_v10, %v2550_v8  ;;  %v2585_v12 = vpop.f32.mrb[1].mxu1  ;;  %v2553_v13 = vpop.f32.mrb[2].mxu0 }
  0xf9   :  { %v2586_v14 = vadd.f32 %v2585_v12, %v2584_v9  ;;  %v2587_v15 = vpop.f32.mrb[2].mxu1  ;;  %v2554_v16 = vpop.f32.mrb[3].mxu0 }
  0xfa   :  { %v2555_v17 = vadd.f32 %v2554_v16, %v2553_v13  ;;  %v2588_v18 = vpop.f32.mrb[3].mxu1 }
  0xfb   :  { %v1106_v19 = vadd.f32 %v2586_v14, %v2552_v11  ;;  %v2589_v20 = vadd.f32 %v2588_v18, %v2587_v15 }
  0xfd   :  { %v1109_v21 = vadd.f32 %v2589_v20, %v2555_v17 }
  0xfe   :  { %v2556_v22 = vpop.f32.mrb[4].mxu0 }
  0xff   :  { %v2590_v23 = vpop.f32.mrb[4].mxu1  ;;  %v2557_v24 = vpop.f32.mrb[5].mxu0 }
 0x100   :  { %v2558_v25 = vadd.f32 %v2557_v24, %v2556_v22  ;;  %v2591_v26 = vpop.f32.mrb[5].mxu1  ;;  %v2559_v27 = vpop.f32.mrb[6].mxu0 }
 0x101   :  { %v2592_v28 = vadd.f32 %v2591_v26, %v2590_v23  ;;  %v2593_v29 = vpop.f32.mrb[6].mxu1  ;;  %v2560_v30 = vpop.f32.mrb[7].mxu0 }
 0x102   :  { %v2561_v31 = vadd.f32 %v2560_v30, %v2559_v27  ;;  %v2594_v32 = vpop.f32.mrb[7].mxu1 }
 0x103   :  { %v1114_v33 = vadd.f32 %v2592_v28, %v2558_v25  ;;  %v2595_v34 = vadd.f32 %v2594_v32, %v2593_v29 }
 0x105   :  { %v1117_v35 = vadd.f32 %v2595_v34, %v2561_v31 }
 0x106   :  { %v2562_v36 = vpop.f32.mrb[8].mxu0 }
 0x107   :  { %v2596_v37 = vpop.f32.mrb[8].mxu1  ;;  %v2563_v38 = vpop.f32.mrb[9].mxu0 }
 0x108   :  { %v2564_v39 = vadd.f32 %v2563_v38, %v2562_v36  ;;  %v2597_v40 = vpop.f32.mrb[9].mxu1  ;;  %v2565_v41 = vpop.f32.mrb[10].mxu0 }
 0x109   :  { %v2598_v42 = vadd.f32 %v2597_v40, %v2596_v37  ;;  %v2599_v43 = vpop.f32.mrb[10].mxu1  ;;  %v2566_v44 = vpop.f32.mrb[11].mxu0 }
 0x10a   :  { %v2567_v45 = vadd.f32 %v2566_v44, %v2565_v41  ;;  %v2600_v46 = vpop.f32.mrb[11].mxu1 }
 0x10b   :  { %v1122_v47 = vadd.f32 %v2598_v42, %v2564_v39  ;;  %v2601_v48 = vadd.f32 %v2600_v46, %v2599_v43 }
 0x10d   :  { %v1125_v49 = vadd.f32 %v2601_v48, %v2567_v45 }
 0x116   :  { %v2618_v50 = vpop.f32.mrb[12].mxu0 }
 0x117   :  { %v2652_v51 = vpop.f32.mrb[12].mxu1  ;;  %v2619_v52 = vpop.f32.mrb[13].mxu0 }
 0x118   :  { %v2620_v53 = vadd.f32 %v2619_v52, %v2618_v50  ;;  %v2653_v54 = vpop.f32.mrb[13].mxu1  ;;  %v2621_v55 = vpop.f32.mrb[14].mxu0 }
 0x119   :  { %v2654_v56 = vadd.f32 %v2653_v54, %v2652_v51  ;;  %v2655_v57 = vpop.f32.mrb[14].mxu1  ;;  %v2622_v58 = vpop.f32.mrb[15].mxu0 }
 0x11a   :  { %v1163_v59 = vadd.f32 %v2620_v53, %v1106_v19  ;;  %v2623_v60 = vadd.f32 %v2622_v58, %v2621_v55  ;;  %v2656_v61 = vpop.f32.mrb[15].mxu1 }
 0x11b   :  { %v2657_v62 = vadd.f32 %v2656_v61, %v2655_v57 }
 0x11c   :  { %v1220_v63 = vadd.f32 %v2654_v56, %v1163_v59  ;;  %v1166_v0 = vadd.f32 %v2623_v60, %v1109_v21 }
 0x11e   :  { %v1223_v2 = vadd.f32 %v2657_v62, %v1166_v0  ;;  %v2624_v3 = vpop.f32.mrb[16].mxu0 }
 0x11f   :  { %v2625_v4 = vpop.f32.mrb[17].mxu0  ;;  %v2658_v9 = vpop.f32.mrb[16].mxu1 }
 0x120   :  { %v2626_v5 = vadd.f32 %v2625_v4, %v2624_v3  ;;  %v2627_v6 = vpop.f32.mrb[18].mxu0  ;;  %v2659_v11 = vpop.f32.mrb[17].mxu1 }
 0x121   :  { %v2628_v7 = vpop.f32.mrb[19].mxu0  ;;  %v2660_v13 = vadd.f32 %v2659_v11, %v2658_v9  ;;  %v2661_v14 = vpop.f32.mrb[18].mxu1 }
 0x122   :  { %v1171_v8 = vadd.f32 %v2626_v5, %v1114_v33  ;;  %v2629_v10 = vadd.f32 %v2628_v7, %v2627_v6  ;;  %v2662_v15 = vpop.f32.mrb[19].mxu1 }
 0x123   :  { %v2663_v17 = vadd.f32 %v2662_v15, %v2661_v14  ;;  %v3041_v14 = vmov 0.0   ;;  %v3522_v15 = vld [vmem:[%s3781_s9] sm:$0xff]  }
 0x124   :  { %v1174_v12 = vadd.f32 %v2629_v10, %v1117_v35  ;;  %v1228_v16 = vadd.f32 %v2660_v13, %v1171_v8  ;;  %2775 = vmatprep.subr.bf16.mxu1 %v3041_v14  ;;  %2781 = vmatprep.mubr.msk.bf16.mxu1 %vm3043_vm4, %v3041_v14 }
 0x125   :  { %2776 = vmatpush3.bf16.msra.mxu1 %v3522_v15 }
 0x126   :  { %v2630_v18 = vpop.f32.mrb[20].mxu0  ;;  %v1231_v19 = vadd.f32 %v2663_v17, %v1174_v12  ;;  %2777 = vmatprep.subr.bf16.mxu1 %v3041_v14  ;;  %v1381_v17 = vpop.permute.xlu0 %1380 }
 0x127   :  { %v2631_v20 = vpop.f32.mrb[21].mxu0  ;;  %v2664_v25 = vpop.f32.mrb[20].mxu1 }
 0x128   :  { %v2632_v21 = vadd.f32 %v2631_v20, %v2630_v18  ;;  %v2633_v22 = vpop.f32.mrb[22].mxu0  ;;  %v2665_v27 = vpop.f32.mrb[21].mxu1  ;;  %v3007_v20 = vld [vmem:[%s3781_s9 + $0x10] ss:$0 sps:$4 sm:$0x77]  }
 0x129   :  { %v2634_v23 = vpop.f32.mrb[23].mxu0  ;;  %v2666_v29 = vadd.f32 %v2665_v27, %v2664_v25  ;;  %v2667_v30 = vpop.f32.mrb[22].mxu1 }
 0x12a   :  { %v1179_v24 = vadd.f32 %v2632_v21, %v1122_v47  ;;  %v2635_v26 = vadd.f32 %v2634_v23, %v2633_v22  ;;  %v2668_v31 = vpop.f32.mrb[23].mxu1  ;;  %v3042_v21 = vmov 65535  }
 0x12b   :  { %v2669_v33 = vadd.f32 %v2668_v31, %v2667_v30  ;;  %v1429_v22 = vsel %vm1427_vm2, 4294967295, %v3042_v21 }
 0x12c   :  { %v1182_v28 = vadd.f32 %v2635_v26, %v1125_v49  ;;  %v1236_v32 = vadd.f32 %v2666_v29, %v1179_v24  ;;  %v1430_v24 = vsel %vm1428_vm3, %v1429_v22, 0 }
 0x12d   :  { %v1432_v26 = vand.u32 %v3007_v20, %v1430_v24 }
 0x12e   :  { %v1239_v34 = vadd.f32 %v2669_v33, %v1182_v28 }
 0x136   :  { %v2686_v35 = vpop.f32.mrb[24].mxu0 }
 0x137   :  { %v2687_v36 = vpop.f32.mrb[25].mxu0 }
 0x138   :  { %v2688_v37 = vadd.f32 %v2687_v36, %v2686_v35  ;;  %v2689_v38 = vpop.f32.mrb[26].mxu0 }
 0x139   :  { %v2690_v39 = vpop.f32.mrb[27].mxu0 }
 0x13a   :  { %v2691_v40 = vadd.f32 %v2690_v39, %v2689_v38  ;;  %v1277_v41 = vadd.f32 %v2688_v37, %v1220_v63  ;;  %v1602_v37 = vld [vmem:[%s3782_s4] sm:$0xff] }
 0x13c   :  { %v1280_v42 = vadd.f32 %v2691_v40, %v1223_v2 }
 0x13e   :  { %v2692_v43 = vpop.f32.mrb[28].mxu0 }
 0x13f   :  { %v2693_v44 = vpop.f32.mrb[29].mxu0 }
 0x140   :  { %v2694_v45 = vadd.f32 %v2693_v44, %v2692_v43  ;;  %v2695_v46 = vpop.f32.mrb[30].mxu0  ;;  %v3008_v44 = vld [vmem:[%s3783_s3] sm:$0xff]  }
 0x141   :  { %v2696_v47 = vpop.f32.mrb[31].mxu0  ;;  %2787 = vmatprep.mubr.msk.bf16.mxu0 %vm1504_vm6, %v3008_v44 }
 0x142   :  { %v2697_v48 = vadd.f32 %v2696_v47, %v2695_v46  ;;  %v1285_v49 = vadd.f32 %v2694_v45, %v1228_v16  ;;  %v3528_v16 = vld [vmem:[%s3781_s9 + $0x8] sm:$0xff]  }
 0x143   :  { %2778 = vmatpush3.bf16.msra.mxu1 %v3528_v16  ;;  %v1603_v45 = vld [vmem:[%s3782_s4 + $0x8] sm:$0xff] }
 0x144   :  { %v1288_v50 = vadd.f32 %v2697_v48, %v1231_v19  ;;  %2779 = vmatprep.subr.bf16.mxu1 %v3041_v14  ;;  %v1386_v19 = vpop.permute.xlu0 %1385 }
 0x146   :  { %v2698_v51 = vpop.f32.mrb[32].mxu0 }
 0x147   :  { %v2699_v52 = vpop.f32.mrb[33].mxu0  ;;  %2780 = vmatpush3.bf16.msra.mxu1 %v1432_v26 }
 0x148   :  { %v2700_v53 = vadd.f32 %v2699_v52, %v2698_v51  ;;  %v2701_v54 = vpop.f32.mrb[34].mxu0  ;;  %v3009_v51 = vld [vmem:[%s3783_s3 + $0x8] sm:$0xff]   ;;  %v3010_v52 = vld [vmem:[%s3783_s3 + $0x10] sm:$0xff]  }
 0x149   :  { %v2702_v55 = vpop.f32.mrb[35].mxu0 }
 0x14a   :  { %v2703_v56 = vadd.f32 %v2702_v55, %v2701_v54  ;;  %v1293_v57 = vadd.f32 %v2700_v53, %v1236_v32  ;;  %v3011_v53 = vld [vmem:[%s3783_s3 + $0x18] sm:$0xff]   ;;  %v3014_v55 = vld [vmem:[%s3784_s5 + $0x4] ss:$12 sps:$4 sm:$0xff]  }
 0x14c   :  { %v1296_v58 = vadd.f32 %v2703_v56, %v1239_v34  ;;  %v3012_v56 = vld [vmem:[%s3784_s5] ss:$12 sps:$4 sm:$0xff]  }
 0x14f   :  { %v1333_v59 = vpop.f32.mrb[24].mxu1 }
 0x150   :  { %v1334_v60 = vadd.f32 %v1333_v59, %v1277_v41  ;;  %v1335_v61 = vpop.f32.mrb[25].mxu1 }
 0x151   :  { %v1336_v62 = vpop.f32.mrb[26].mxu1 }
 0x152   :  { %v1337_v63 = vadd.f32 %v1336_v62, %v1280_v42  ;;  %v1338_v0 = vpop.f32.mrb[27].mxu1 }
 0x157   :  { %v1341_v2 = vpop.f32.mrb[28].mxu1 }
 0x158   :  { %v1342_v3 = vadd.f32 %v1341_v2, %v1285_v49  ;;  %v1343_v4 = vpop.f32.mrb[29].mxu1 }
 0x159   :  { %v1344_v5 = vpop.f32.mrb[30].mxu1 }
 0x15a   :  { %v1345_v6 = vadd.f32 %v1344_v5, %v1288_v50  ;;  %v1346_v7 = vpop.f32.mrb[31].mxu1  ;;  %1358 = vrot.lane.b32.xlu1 %v1342_v3, %s3039_s1 }
 0x15b   :  { %v1605_v7 = vld [vmem:[%s3782_s4 + $0x18] sm:$0xff] }
 0x15e   :  { %1360 = vrot.lane.b32.xlu1 %v1345_v6, %s3039_s1  ;;  %v1604_v6 = vld [vmem:[%s3782_s4 + $0x10] sm:$0xff] }
 0x15f   :  { %v1349_v8 = vpop.f32.mrb[32].mxu1 }
 0x160   :  { %v1350_v9 = vadd.f32 %v1349_v8, %v1293_v57  ;;  %v1351_v10 = vpop.f32.mrb[33].mxu1 }
 0x161   :  { %v1352_v11 = vpop.f32.mrb[34].mxu1 }
 0x162   :  { %v1353_v12 = vadd.f32 %v1352_v11, %v1296_v58  ;;  %v1354_v13 = vpop.f32.mrb[35].mxu1  ;;  %1368 = vrot.lane.b32.xlu0 %v1350_v9, %s3040_s2  ;;  %v1783_v58 = vld [vmem:[%s3784_s5 + $0x18] sm:$0x11] }
 0x163   :  { %v2494_v61 = vcombine.low %v1783_v58, %v1783_v58  ;;  %v3017_v13 = vld [vmem:[%s3784_s5 + $0x8] ss:$12 sps:$4 sm:$0xff]  }
 0x164   :  { %1370 = vrot.lane.b32.xlu1 %v1353_v12, %s3040_s2 }
 0x165   :  { %v1841_v0 = vsel %vm1839_vm7, %v2494_v61, 0  ;;  %v3034_v61 = vld [vmem:[%s3785_s7 + $0x90] sm:$0x3f]  }
 0x1cc   :  { %v1359_v18 = vpop.permute.xlu1 %1358 }
 0x1cd   :  { %v1364_v25 = vadd.f32 %v1359_v18, %v1334_v60  ;;  %v2495_v60 = vcombine.high %v1783_v58, %v1783_v58 }
 0x1d0   :  { %v1361_v23 = vpop.permute.xlu1 %1360 }
 0x1d1   :  { %v1365_v28 = vadd.f32 %v1361_v23, %v1337_v63 }
 0x1d4   :  { %v1369_v27 = vpop.permute.xlu0 %1368 }
 0x1d5   :  { %v1374_v29 = vadd.f32 %v1369_v27, %v1364_v25 }
 0x1d6   :  { %v1371_v30 = vpop.permute.xlu1 %1370 }
 0x1d7   :  { %v1388_v31 = vadd.f32 %v1381_v17, %v1374_v29  ;;  %v1375_v32 = vadd.f32 %v1371_v30, %v1365_v28 }
 0x1d9   :  { %v1389_v33 = vadd.f32 %v1386_v19, %v1375_v32  ;;  %v1390_v34 = vmax.f32 %v1388_v31, 0.0 }
 0x1db   :  { %v1391_v35 = vmax.f32 %v1389_v33, 0.0 }
 0x1dd   :  { %v2851_v36 = vpack.i.bf16 %v1391_v35, %v1390_v34 }
 0x1df   :  { %2852 = vrot.lane.b32.xlu0 %v2851_v36, %s3039_s1 }
 0x1e3   :  { %1608 = vperm.xlu0 %2850, %v1602_v37  }
 0x251   :  { %v2853_v38 = vpop.permute.xlu0 %2852 }
 0x252   :  { %v2855_v39 = vunpack.i.h.bf16 %v2853_v38  ;;  %v2854_v40 = vunpack.i.l.bf16 %v2853_v38  ;;  %v3019_v38 = vld [vmem:[%s3785_s7 + $0x40] sm:$0xff]  }
 0x254   :  { %v1401_v41 = vmax.f32 %v1391_v35, %v2855_v39  ;;  %v1400_v42 = vmax.f32 %v1390_v34, %v2854_v40  ;;  %v3020_v39 = vld [vmem:[%s3785_s7] sm:$0xff]   ;;  %v3021_v40 = vld [vmem:[%s3785_s7 + $0x48] sm:$0xff]  }
 0x256   :  { %v1402_v43 = vpack.c.bf16 %v1401_v41, %v1400_v42  ;;  %v3022_v41 = vld [vmem:[%s3785_s7 + $0x8] sm:$0xff]   ;;  %v3023_v42 = vld [vmem:[%s3785_s7 + $0x50] sm:$0xff]  }
 0x258   :  { %1635 = vrot.lane.b32.xlu1 %v1402_v43, %s3044_s23  ;;  %2782 = vmatmul.mubr.msk.bf16.vlgmr.msra.gmra.mrb[36].mxu1 %vm1423_vm5, %v1402_v43  ;;  %v3024_v43 = vld [vmem:[%s3785_s7 + $0x10] sm:$0xff]  }
 0x259   :  { %2807 = vmatprep.mubr.msk.bf16.mxu1 %vm1504_vm6, %v3008_v44 }
 0x25c   :  { %1613 = vperm.xlu1 %2856, %v1603_v45  }
 0x2ca   :  { %v1636_v54 = vpop.permute.xlu1 %1635 }
 0x2db   :  { %v3606_v17 = vpop.permute.xlu1 %1613 }
 0x32b   :  { %v1468_v46 = vpop.f32.mrb[36].mxu1 }
 0x32c   :  { %v2783_v47 = vpop.f32.mrb[37].mxu1 }
 0x32d   :  { %v1471_v48 = vpop.f32.mrb[38].mxu1 }
 0x32e   :  { %v1483_v49 = vpack.c.bf16 %v1471_v48, %v1468_v46  ;;  %v2784_v50 = vpop.f32.mrb[39].mxu1  ;;  %v3025_v46 = vld [vmem:[%s3785_s7 + $0x58] sm:$0xff]  }
 0x32f   :  { %v3027_v50 = vld [vmem:[%s3785_s7 + $0x60] sm:$0xff]  }
 0x330   :  { %2785 = vmatprep.subr.bf16.mxu0 %v1483_v49 }
 0x331   :  { %2786 = vmatpush3.bf16.msra.mxu0 %v1483_v49  ;;  %v3026_v49 = vld [vmem:[%s3785_s7 + $0x18] sm:$0xff]  }
 0x332   :  { %2795 = vmatprep.subr.bf16.mxu0 %v3041_v14 }
 0x334   :  { %2788 = vmatmul.mubr.msk.bf16.vlgmr.msra.gmra.mrb[36].mxu0 %vm1504_vm6, %v3009_v51 }
 0x335   :  { %2796 = vmatpush3.bf16.msra.mxu0 %v3522_v15  ;;  %2791 = vmatprep.mubr.msk.bf16.mxu0 %vm1504_vm6, %v3010_v52 }
 0x336   :  { %2797 = vmatprep.subr.bf16.mxu0 %v3041_v14 }
 0x339   :  { %2798 = vmatpush3.bf16.msra.mxu0 %v3528_v16  ;;  %v3604_v16 = vpop.permute.xlu0 %1608 }
 0x33a   :  { %2799 = vmatprep.subr.bf16.mxu0 %v3041_v14 }
 0x33c   :  { %2792 = vmatmul.mubr.msk.bf16.gmra.mrb[40].mxu0 %vm1504_vm6, %v3011_v53 }
 0x33d   :  { %2800 = vmatpush3.bf16.msra.mxu0 %v1432_v26  ;;  %2801 = vmatprep.mubr.msk.bf16.mxu0 %vm3043_vm4, %v3041_v14  ;;  %v3018_v14 = vld [vmem:[%s3784_s5 + $0x20] ss:$0 sps:$4 sm:$0x11]  }
 0x33e   :  { %1849 = vmatprep.subr.bf16.mxu0 %v3014_v55  ;;  %v1847_v15 = vsel %vm1839_vm7, %v3018_v14, 0 }
 0x344   :  { %2802 = vmatmul.mubr.msk.bf16.vlgmr.msra.gmra.mrb[44].mxu0 %vm1423_vm5, %v1636_v54 }
 0x345   :  { %1881 = vmatprep.mubr.bf16.mxu0 %v3038_v1  ;;  %1850 = vmatpush1.bf16.msra.mxu0 %v3012_v56  ;;  %v3030_v56 = vld [vmem:[%s3785_s7 + $0x68] sm:$0xff]  }
 0x346   :  { %2497 = vmatprep.subr.msk.bf16.mxu0 %vm1839_vm7, %v2495_v60  ;;  %v3033_v60 = vld [vmem:[%s3785_s7 + $0x70] sm:$0xff]  }
 0x349   :  { %1852 = vmatpush1.bf16.msra.mxu0 %v1841_v0  ;;  %v3036_v0 = vld [vmem:[%s3785_s7 + $0x78] sm:$0xff]  }
 0x34a   :  { %2728 = vmatprep.subr.bf16.mxu0 %v3019_v38 }
 0x407   :  { %v2789_v57 = vpop.f32.mrb[36].mxu0 }
 0x408   :  { %v1551_v59 = vpop.f32.mrb[37].mxu0 }
 0x409   :  { %v2790_v62 = vpop.f32.mrb[38].mxu0 }
 0x40a   :  { %v1554_v63 = vpop.f32.mrb[39].mxu0 }
 0x40f   :  { %v2793_v2 = vpop.f32.mrb[40].mxu0 }
 0x410   :  { %v1567_v3 = vpop.f32.mrb[41].mxu0 }
 0x411   :  { %1586 = vrot.lane.b32.xlu0 %v1567_v3, %s3039_s1  ;;  %v2794_v4 = vpop.f32.mrb[42].mxu0  ;;  %v1787_v3 = vlaneseq }
 0x412   :  { %v1570_v5 = vpop.f32.mrb[43].mxu0 }
 0x413   :  { %1588 = vrot.lane.b32.xlu1 %v1570_v5, %s3039_s1 }
 0x415   :  { %1618 = vperm.xlu0 %2850, %v1604_v6   ;;  %v1785_v6 = vld [vmem:[%s3786_s6] sm:$0x7] }
 0x417   :  { %1623 = vperm.xlu1 %2856, %v1605_v7   ;;  %v1674_v8 = vpop.f32.mrb[44].mxu0 }
 0x418   :  { %v2803_v9 = vpop.f32.mrb[45].mxu0 }
 0x419   :  { %v1677_v10 = vpop.f32.mrb[46].mxu0  ;;  %1590 = vrot.lane.b32.xlu0 %v2793_v2, %s3039_s1  ;;  %v3037_v2 = vld [vmem:[%s3785_s7 + $0x38] sm:$0xff]  }
 0x41a   :  { %v1681_v11 = vpack.c.bf16 %v1677_v10, %v1674_v8  ;;  %v2804_v12 = vpop.f32.mrb[47].mxu0 }
 0x41b   :  { %1592 = vrot.lane.b32.xlu1 %v2794_v4, %s3039_s1  ;;  %v1788_v4 = vshrl.u32 %v1787_v3, 7 }
 0x41c   :  { %2805 = vmatprep.subr.bf16.mxu1 %v1681_v11 }
 0x41d   :  { %2806 = vmatpush3.bf16.msra.mxu1 %v1681_v11  ;;  %v1789_v5 = vsub.s32 0, %v1788_v4  ;;  %v1793_v7 = vsub.s32 1, %v1788_v4 }
 0x41e   :  { %2815 = vmatprep.subr.bf16.mxu1 %v3017_v13 }
 0x41f   :  { %v3696_v8 = vrot.slane %v1785_v6, %v1789_v5  ;;  %v3698_v9 = vrot.slane %v1785_v6, %v1793_v7 }
 0x420   :  { %2808 = vmatmul.mubr.msk.bf16.vlgmr.msra.gmra.mrb[40].mxu1 %vm1504_vm6, %v3009_v51  ;;  %v3028_v51 = vld [vmem:[%s3785_s7 + $0x80] sm:$0xff]  }
 0x421   :  { %2811 = vmatprep.mubr.msk.bf16.mxu1 %vm1504_vm6, %v3010_v52  ;;  %2816 = vmatpush3.bf16.msra.mxu1 %v3017_v13  ;;  %v3029_v52 = vld [vmem:[%s3785_s7 + $0x20] sm:$0xff]  }
 0x422   :  { %2841 = vmatprep.subr.msk.bf16.mxu1 %vm1839_vm7, %v3018_v14 }
 0x425   :  { %2818 = vmatpush3.bf16.msra.mxu1 %v1847_v15 }
 0x426   :  { %2827 = vmatprep.subr.bf16.mxu1 %v3028_v51 }
 0x428   :  { %2812 = vmatmul.mubr.msk.bf16.gmra.mrb[44].mxu1 %vm1504_vm6, %v3011_v53 }
 0x483   :  { %v1587_v18 = vpop.permute.xlu0 %1586 }
 0x484   :  { %v1598_v19 = vadd.f32 %v1587_v18, %v1551_v59  ;;  %v3032_v59 = vld [vmem:[%s3785_s7 + $0x28] sm:$0xff]  }
 0x485   :  { %v1589_v20 = vpop.permute.xlu1 %1588 }
 0x486   :  { %v1626_v21 = vadd.f32 %v3604_v16, %v1598_v19  ;;  %v1599_v22 = vadd.f32 %v1589_v20, %v1554_v63  ;;  %v2195_v63 = vsel %vm1010_vm1, %v3034_v61, 0 }
 0x488   :  { %v1627_v23 = vadd.f32 %v3606_v17, %v1599_v22  ;;  %v1630_v24 = vmax.f32 %v1626_v21, 0.0 }
 0x48a   :  { %v1631_v25 = vmax.f32 %v1627_v23, 0.0 }
 0x48c   :  { %v1775_v26 = vpack.c.bf16 %v1631_v25, %v1630_v24 }
 0x48e   :  { %2498 = vmatmul.mubr.msk.bf16.vlgmr.msra.gmra.mrb[48].mxu0 %vm1826_vm8, %v1775_v26  ;;  %2819 = vmatprep.mubr.msk.bf16.mxu1 %vm1826_vm8, %v1775_v26 }
 0x48f   :  { %1891 = vmatprep.mubr.bf16.mxu0 %v3038_v1  ;;  %2729 = vmatpush3.bf16.msra.mxu0 %v3020_v39 }
 0x490   :  { %2730 = vmatprep.subr.bf16.mxu0 %v3021_v40 }
 0x493   :  { %2731 = vmatpush3.bf16.msra.mxu0 %v3022_v41 }
 0x494   :  { %v3613_v27 = vpop.permute.xlu0 %1618  ;;  %2732 = vmatprep.subr.bf16.mxu0 %v3023_v42 }
 0x496   :  { %v3615_v28 = vpop.permute.xlu1 %1623 }
 0x497   :  { %2733 = vmatpush3.bf16.msra.mxu0 %v3024_v43 }
 0x498   :  { %v1591_v29 = vpop.permute.xlu0 %1590  ;;  %2734 = vmatprep.subr.bf16.mxu0 %v3025_v46 }
 0x499   :  { %v1600_v30 = vadd.f32 %v2789_v57, %v1591_v29  ;;  %v3031_v57 = vld [vmem:[%s3785_s7 + $0x88] sm:$0xff]   ;;  %v1797_v29 = vsub.s32 2, %v1788_v4 }
 0x49a   :  { %v1593_v31 = vpop.permute.xlu1 %1592 }
 0x49b   :  { %v1628_v32 = vadd.f32 %v3613_v27, %v1600_v30  ;;  %v1601_v33 = vadd.f32 %v2790_v62, %v1593_v31  ;;  %2735 = vmatpush3.bf16.msra.mxu0 %v3026_v49  ;;  %v3035_v62 = vld [vmem:[%s3785_s7 + $0x30] sm:$0xff]  }
 0x49c   :  { %2736 = vmatprep.subr.bf16.mxu0 %v3027_v50 }
 0x49d   :  { %v1629_v34 = vadd.f32 %v3615_v28, %v1601_v33  ;;  %v1632_v35 = vmax.f32 %v1628_v32, 0.0 }
 0x49f   :  { %v1633_v36 = vmax.f32 %v1629_v34, 0.0  ;;  %2737 = vmatpush3.bf16.msra.mxu0 %v3029_v52 }
 0x4a0   :  { %2738 = vmatprep.subr.bf16.mxu0 %v3030_v56 }
 0x4a1   :  { %v1776_v37 = vpack.c.bf16 %v1633_v36, %v1632_v35  ;;  %v3707_v35 = vrot.slane %v1785_v6, %v1797_v29 }
 0x4a3   :  { %2499 = vmatmul.mubr.msk.bf16.gmra.mrb[52].mxu0 %vm1826_vm8, %v1776_v37  ;;  %2820 = vmatmul.mubr.msk.bf16.vlgmr.msra.gmra.mrb[48].mxu1 %vm1826_vm8, %v1776_v37 }
 0x4a4   :  { %1901 = vmatprep.mubr.bf16.mxu0 %v3038_v1  ;;  %2828 = vmatpush3.bf16.msra.mxu1 %v3028_v51 }
 0x4a5   :  { %2829 = vmatprep.subr.bf16.mxu1 %v3031_v57  ;;  %2739 = vmatpush3.bf16.msra.mxu0 %v3032_v59 }
 0x4a6   :  { %2740 = vmatprep.subr.bf16.mxu0 %v3033_v60 }
 0x4a8   :  { %2830 = vmatpush3.bf16.msra.mxu1 %v3031_v57 }
 0x4a9   :  { %2842 = vmatprep.subr.msk.bf16.mxu1 %vm1010_vm1, %v3034_v61  ;;  %2741 = vmatpush3.bf16.msra.mxu0 %v3035_v62 }
 0x4aa   :  { %2742 = vmatprep.subr.bf16.mxu0 %v3036_v0 }
 0x4ac   :  { %2832 = vmatpush3.bf16.msra.mxu1 %v2195_v63 }
 0x4ad   :  { %2743 = vmatpush3.bf16.msra.mxu0 %v3037_v2 }
 0x4f3   :  { %v3640_v44 = vpop.f32.mrb[40].mxu1 }
 0x4f4   :  { %v3642_v45 = vpop.f32.mrb[41].mxu1 }
 0x4f5   :  { %v3647_v47 = vpop.f32.mrb[42].mxu1 }
 0x4f6   :  { %v3649_v48 = vpop.f32.mrb[43].mxu1 }
 0x4fb   :  { %v2813_v53 = vpop.f32.mrb[44].mxu1 }
 0x4fc   :  { %v1732_v54 = vpop.f32.mrb[45].mxu1 }
 0x4fd   :  { %1751 = vrot.lane.b32.xlu0 %v1732_v54, %s3039_s1  ;;  %v2814_v55 = vpop.f32.mrb[46].mxu1 }
 0x4fe   :  { %v1735_v58 = vpop.f32.mrb[47].mxu1 }
 0x4ff   :  { %1753 = vrot.lane.b32.xlu1 %v1735_v58, %s3039_s1 }
 0x501   :  { %1755 = vrot.lane.b32.xlu0 %v2813_v53, %s3039_s1 }
 0x503   :  { %1757 = vrot.lane.b32.xlu1 %v2814_v55, %s3039_s1 }
 0x561   :  { %v1883_v10 = vpop.f32.mrb[48].mxu0 }
 0x562   :  { %v1884_v11 = vadd.f32 %v1883_v10, %v3696_v8  ;;  %v1885_v12 = vpop.f32.mrb[49].mxu0 }
 0x563   :  { %v1886_v13 = vadd.f32 %v1885_v12, %v3698_v9  ;;  %v1887_v14 = vpop.f32.mrb[50].mxu0 }
 0x564   :  { %v1888_v15 = vadd.f32 %v1887_v14, %v3696_v8  ;;  %v1889_v18 = vpop.f32.mrb[51].mxu0  ;;  %v1987_v20 = vmax.f32 %v1884_v11, 0.0 }
 0x565   :  { %v1890_v19 = vadd.f32 %v1889_v18, %v3698_v9  ;;  %v1988_v22 = vmax.f32 %v1886_v13, 0.0 }
 0x566   :  { %v1990_v21 = vmax.f32 %v1888_v15, 0.0 }
 0x567   :  { %v1991_v23 = vmax.f32 %v1890_v19, 0.0 }
 0x568   :  { %v2011_v24 = vpack.c.bf16 %v1990_v21, %v1987_v20 }
 0x569   :  { %v2012_v25 = vpack.c.bf16 %v1991_v23, %v1988_v22 }
 0x56f   :  { %v1752_v26 = vpop.permute.xlu0 %1751 }
 0x570   :  { %v1763_v30 = vadd.f32 %v1752_v26, %v3642_v45 }
 0x571   :  { %v1754_v31 = vpop.permute.xlu1 %1753 }
 0x572   :  { %v1767_v32 = vadd.f32 %v1763_v30, %v3604_v16  ;;  %v1764_v33 = vadd.f32 %v1754_v31, %v3649_v48 }
 0x573   :  { %v1756_v34 = vpop.permute.xlu0 %1755 }
 0x574   :  { %v1768_v36 = vadd.f32 %v1764_v33, %v3606_v17  ;;  %v1765_v37 = vadd.f32 %v3640_v44, %v1756_v34  ;;  %v1771_v39 = vmax.f32 %v1767_v32, 0.0 }
 0x575   :  { %v1758_v38 = vpop.permute.xlu1 %1757 }
 0x576   :  { %v1772_v40 = vmax.f32 %v1768_v36, 0.0  ;;  %v1769_v41 = vadd.f32 %v1765_v37, %v3613_v27  ;;  %v1766_v42 = vadd.f32 %v3647_v47, %v1758_v38  ;;  %v1893_v43 = vpop.f32.mrb[52].mxu0  ;;  %v2821_v45 = vpop.f32.mrb[48].mxu1 }
 0x577   :  { %v1894_v16 = vadd.f32 %v1893_v43, %v3696_v8  ;;  %v1965_v46 = vadd.f32 %v2821_v45, %v3707_v35  ;;  %v1895_v48 = vpop.f32.mrb[53].mxu0  ;;  %v1956_v49 = vpop.f32.mrb[49].mxu1 }
 0x578   :  { %v1777_v50 = vpack.c.bf16 %v1772_v40, %v1771_v39  ;;  %v1770_v17 = vadd.f32 %v1766_v42, %v3615_v28  ;;  %v1896_v44 = vadd.f32 %v1895_v48, %v3698_v9  ;;  %v1897_v51 = vpop.f32.mrb[54].mxu0  ;;  %v2822_v52 = vpop.f32.mrb[50].mxu1  ;;  %v1957_v53 = vadd.f32 %v1956_v49, %v3707_v35 }
 0x579   :  { %v1898_v27 = vadd.f32 %v1897_v51, %v3696_v8  ;;  %v1899_v47 = vpop.f32.mrb[55].mxu0  ;;  %v1959_v54 = vpop.f32.mrb[51].mxu1  ;;  %v1773_v55 = vmax.f32 %v1769_v41, 0.0  ;;  %v1968_v57 = vadd.f32 %v2822_v52, %v3707_v35  ;;  %v1993_v28 = vmax.f32 %v1894_v16, 0.0 }
 0x57a   :  { %v1774_v56 = vmax.f32 %v1770_v17, 0.0  ;;  %v1900_v58 = vadd.f32 %v1899_v47, %v3698_v9  ;;  %2500 = vmatmul.mubr.msk.bf16.gmra.mrb[56].mxu0 %vm1826_vm8, %v1777_v50  ;;  %2823 = vmatprep.mubr.msk.bf16.mxu1 %vm1826_vm8, %v1777_v50  ;;  %v1995_v59 = vmax.f32 %v1965_v46, 0.0  ;;  %v1960_v61 = vadd.f32 %v1959_v54, %v3707_v35 }
 0x57b   :  { %v1996_v60 = vmax.f32 %v1898_v27, 0.0  ;;  %1911 = vmatprep.mubr.bf16.mxu0 %v3038_v1  ;;  %v1994_v63 = vmax.f32 %v1896_v44, 0.0  ;;  %v1998_v0 = vmax.f32 %v1968_v57, 0.0  ;;  %v1989_v3 = vmax.f32 %v1957_v53, 0.0  ;;  %v2506_v57 = vld [vmem:[%s3787_s8] ss:$0 sm:$0xff] }
 0x57c   :  { %v1778_v62 = vpack.c.bf16 %v1774_v56, %v1773_v55  ;;  %v1997_v2 = vmax.f32 %v1900_v58, 0.0  ;;  %v1992_v5 = vmax.f32 %v1960_v61, 0.0 }
 0x57d   :  { %v2014_v4 = vpack.c.bf16 %v1996_v60, %v1993_v28  ;;  %v2016_v6 = vpack.c.bf16 %v1998_v0, %v1995_v59 }
 0x57e   :  { %v2015_v7 = vpack.c.bf16 %v1997_v2, %v1994_v63  ;;  %2824 = vmatmul.mubr.msk.bf16.gmra.mrb[52].mxu1 %vm1826_vm8, %v1778_v62  ;;  %v2013_v10 = vpack.c.bf16 %v1992_v5, %v1989_v3 }
 0x580   :  { %2833 = vmatprep.mubr.msk.bf16.mxu1 %vm2181_vm9, %v2013_v10 }
 0x582   :  { %2501 = vmatmul.mubr.msk.bf16.gmra.mrb[60].mxu0 %vm1826_vm8, %v1778_v62 }
 0x583   :  { %2229 = vmatprep.mubr.bf16.mxu0 %v2012_v25 }
 0x586   :  { %2834 = vmatmul.mubr.msk.bf16.vlgmr.msra.gmra.mrb[56].mxu1 %vm2181_vm9, %v2016_v6 }
 0x58a   :  { %2230 = vmatmul.mubr.bf16.vlgmr.msra.gmra.mrb[64].mxu0 %v2011_v24 }
 0x58b   :  { %2237 = vmatprep.mubr.bf16.mxu0 %v2015_v7 }
 0x592   :  { %2238 = vmatmul.mubr.bf16.gmra.mrb[68].mxu0 %v2014_v4 }
 0x64d   :  { %v1903_v1 = vpop.f32.mrb[56].mxu0 }
 0x64e   :  { %v1904_v11 = vadd.f32 %v1903_v1, %v3696_v8  ;;  %v1905_v12 = vpop.f32.mrb[57].mxu0 }
 0x64f   :  { %v1906_v13 = vadd.f32 %v1905_v12, %v3698_v9  ;;  %v1907_v14 = vpop.f32.mrb[58].mxu0 }
 0x650   :  { %v1908_v15 = vadd.f32 %v1907_v14, %v3696_v8  ;;  %v1909_v18 = vpop.f32.mrb[59].mxu0  ;;  %v1999_v21 = vmax.f32 %v1904_v11, 0.0 }
 0x651   :  { %v1910_v19 = vadd.f32 %v1909_v18, %v3698_v9  ;;  %v2825_v20 = vpop.f32.mrb[52].mxu1  ;;  %v2000_v25 = vmax.f32 %v1906_v13, 0.0 }
 0x652   :  { %v2002_v22 = vmax.f32 %v1908_v15, 0.0  ;;  %v1981_v23 = vadd.f32 %v2825_v20, %v3707_v35  ;;  %v1972_v24 = vpop.f32.mrb[53].mxu1 }
 0x653   :  { %v2003_v26 = vmax.f32 %v1910_v19, 0.0  ;;  %v1973_v29 = vadd.f32 %v1972_v24, %v3707_v35  ;;  %v2826_v30 = vpop.f32.mrb[54].mxu1 }
 0x654   :  { %v2017_v31 = vpack.c.bf16 %v2002_v22, %v1999_v21  ;;  %v1984_v32 = vadd.f32 %v2826_v30, %v3707_v35  ;;  %v1975_v33 = vpop.f32.mrb[55].mxu1  ;;  %v2007_v38 = vmax.f32 %v1981_v23, 0.0 }
 0x655   :  { %v2018_v34 = vpack.c.bf16 %v2003_v26, %v2000_v25  ;;  %v1976_v36 = vadd.f32 %v1975_v33, %v3707_v35  ;;  %v1913_v37 = vpop.f32.mrb[60].mxu0  ;;  %v2001_v42 = vmax.f32 %v1973_v29, 0.0 }
 0x656   :  { %v2010_v39 = vmax.f32 %v1984_v32, 0.0  ;;  %v1914_v40 = vadd.f32 %v1913_v37, %v3696_v8  ;;  %v1915_v41 = vpop.f32.mrb[61].mxu0 }
 0x657   :  { %v2004_v43 = vmax.f32 %v1976_v36, 0.0  ;;  %v1916_v45 = vadd.f32 %v1915_v41, %v3698_v9  ;;  %v1917_v16 = vpop.f32.mrb[62].mxu0  ;;  %2245 = vmatprep.mubr.bf16.mxu0 %v2018_v34 }
 0x658   :  { %v2022_v46 = vpack.c.bf16 %v2010_v39, %v2007_v38  ;;  %v1918_v48 = vadd.f32 %v1917_v16, %v3696_v8  ;;  %v1919_v49 = vpop.f32.mrb[63].mxu0  ;;  %2246 = vmatmul.mubr.bf16.gmra.mrb[72].mxu0 %v2017_v31  ;;  %v2005_v44 = vmax.f32 %v1914_v40, 0.0 }
 0x659   :  { %v2019_v50 = vpack.c.bf16 %v2004_v43, %v2001_v42  ;;  %v1920_v35 = vadd.f32 %v1919_v49, %v3698_v9  ;;  %v2835_v17 = vpop.f32.mrb[56].mxu1  ;;  %v2006_v53 = vmax.f32 %v1916_v45, 0.0 }
 0x65a   :  { %v2008_v51 = vmax.f32 %v1918_v48, 0.0  ;;  %v2296_v52 = vpop.f32.mrb[57].mxu1 }
 0x65b   :  { %v2009_v27 = vmax.f32 %v1920_v35, 0.0  ;;  %v2836_v47 = vpop.f32.mrb[58].mxu1  ;;  %2837 = vmatprep.mubr.msk.bf16.mxu1 %vm2181_vm9, %v2019_v50 }
 0x65c   :  { %v2020_v54 = vpack.c.bf16 %v2008_v51, %v2005_v44  ;;  %v2299_v55 = vpop.f32.mrb[59].mxu1  ;;  %2838 = vmatmul.mubr.msk.bf16.gmra.mrb[60].mxu1 %vm2181_vm9, %v2022_v46 }
 0x65d   :  { %v2021_v56 = vpack.c.bf16 %v2009_v27, %v2006_v53  ;;  %v2744_v8 = vpop.f32.mrb[64].mxu0 }
 0x65e   :  { %v2745_v9 = vpop.f32.mrb[65].mxu0 }
 0x65f   :  { %v2746_v58 = vadd.f32 %v2745_v9, %v2744_v8  ;;  %v2747_v28 = vpop.f32.mrb[66].mxu0  ;;  %2253 = vmatprep.mubr.bf16.mxu0 %v2021_v56 }
 0x660   :  { %v2748_v59 = vpop.f32.mrb[67].mxu0  ;;  %2254 = vmatmul.mubr.bf16.gmra.mrb[76].mxu0 %v2020_v54 }
 0x661   :  { %v2232_v60 = vadd.f32 %v2746_v58, %v2506_v57  ;;  %v2749_v61 = vadd.f32 %v2748_v59, %v2747_v28 }
 0x663   :  { %v2297_v62 = vadd.f32 %v2296_v52, %v2232_v60  ;;  %v2235_v63 = vadd.f32 %v2749_v61, %v2506_v57 }
 0x665   :  { %2328 = vst.msk [vmem:[%s3788_s10] sm:$0xff] %vm2327_vm10, %v2297_v62  ;;  %v2300_v0 = vadd.f32 %v2299_v55, %v2235_v63  ;;  %v2750_v2 = vpop.f32.mrb[68].mxu0 }
 0x666   :  { %v2751_v3 = vpop.f32.mrb[69].mxu0 }
 0x667   :  { %2329 = vst.msk [vmem:[%s3788_s10 + $0x8] sm:$0xff] %vm2327_vm10, %v2300_v0  ;;  %v2752_v4 = vadd.f32 %v2751_v3, %v2750_v2  ;;  %v2753_v5 = vpop.f32.mrb[70].mxu0 }
 0x668   :  { %v2754_v6 = vpop.f32.mrb[71].mxu0 }
 0x669   :  { %v2240_v7 = vadd.f32 %v2752_v4, %v2506_v57  ;;  %v2755_v10 = vadd.f32 %v2754_v6, %v2753_v5 }
 0x66b   :  { %v2305_v1 = vadd.f32 %v2835_v17, %v2240_v7  ;;  %v2243_v11 = vadd.f32 %v2755_v10, %v2506_v57 }
 0x66d   :  { %2330 = vst.msk [vmem:[%s3788_s10 + $0x10] sm:$0xff] %vm2327_vm10, %v2305_v1  ;;  %v2308_v12 = vadd.f32 %v2836_v47, %v2243_v11 }
 0x66f   :  { %2331 = vst.msk [vmem:[%s3788_s10 + $0x18] sm:$0xff] %vm2327_vm10, %v2308_v12 }
 0x72b   :  { %v2756_v13 = vpop.f32.mrb[72].mxu0 }
 0x72c   :  { %v2757_v14 = vpop.f32.mrb[73].mxu0 }
 0x72d   :  { %v2758_v15 = vadd.f32 %v2757_v14, %v2756_v13  ;;  %v2759_v18 = vpop.f32.mrb[74].mxu0 }
 0x72e   :  { %v2760_v19 = vpop.f32.mrb[75].mxu0 }
 0x72f   :  { %v2761_v20 = vadd.f32 %v2760_v19, %v2759_v18  ;;  %v2839_v21 = vpop.f32.mrb[60].mxu1  ;;  %v2248_v22 = vadd.f32 %v2758_v15, %v2506_v57 }
 0x730   :  { %v2312_v23 = vpop.f32.mrb[61].mxu1 }
 0x731   :  { %v2313_v24 = vadd.f32 %v2312_v23, %v2248_v22  ;;  %v2840_v25 = vpop.f32.mrb[62].mxu1  ;;  %v2251_v26 = vadd.f32 %v2761_v20, %v2506_v57 }
 0x732   :  { %v2315_v29 = vpop.f32.mrb[63].mxu1 }
 0x733   :  { %2530 = vst.msk [vmem:[%s3788_s10 + $0x20] sm:$0xff] %vm2327_vm10, %v2313_v24  ;;  %v2316_v30 = vadd.f32 %v2315_v29, %v2251_v26  ;;  %v2762_v31 = vpop.f32.mrb[76].mxu0 }
 0x734   :  { %v2763_v32 = vpop.f32.mrb[77].mxu0 }
 0x735   :  { %2531 = vst.msk [vmem:[%s3788_s10 + $0x28] sm:$0xff] %vm2327_vm10, %v2316_v30  ;;  %v2764_v33 = vadd.f32 %v2763_v32, %v2762_v31  ;;  %v2765_v34 = vpop.f32.mrb[78].mxu0 }
 0x736   :  { %v2766_v36 = vpop.f32.mrb[79].mxu0 }
 0x737   :  { %v2256_v37 = vadd.f32 %v2764_v33, %v2506_v57  ;;  %v2767_v38 = vadd.f32 %v2766_v36, %v2765_v34 }
 0x739   :  { %v2321_v39 = vadd.f32 %v2839_v21, %v2256_v37  ;;  %v2259_v40 = vadd.f32 %v2767_v38, %v2506_v57 }
 0x73b   :  { %2532 = vst.msk [vmem:[%s3788_s10 + $0x30] sm:$0xff] %vm2327_vm10, %v2321_v39  ;;  %v2324_v41 = vadd.f32 %v2840_v25, %v2259_v40 }
 0x73d   :  { %2533 = vst.msk [vmem:[%s3788_s10 + $0x38] sm:$0xff] %vm2327_vm10, %v2324_v41 }

</bundles_post_ra>
